<compile_context>
chip_gen: v7x
topology: tpu7x:2x2x1
jax: 0.10.0
libtpu: 0.0.40
codegen_flags: <defaults>
</compile_context>

<pallas_src>
import functools

import jax
import jax.numpy as jnp
from jax.experimental import pallas as pl
from jax.experimental.pallas import tpu as pltpu


def _round_up(x, m):
    return -(-x // m) * m


# ----------------------------------------------------------------------------
# Wrapper-side im2col: NCHW image -> (B*H*W, 9*C) patch matrix (3x3, pad=1).
# TODO(synk): for large H/W (esp. v5e) move im2col into the kernel via a halo
# DMA per row-block to avoid the 9x HBM inflation of wrapper-side patches.
# ----------------------------------------------------------------------------
def _im2col_nchw(x):
    B, C, H, W = x.shape
    xh = jnp.transpose(x, (0, 2, 3, 1)).astype(jnp.float32)          # NHWC
    xp = jnp.pad(xh, ((0, 0), (1, 1), (1, 1), (0, 0)))
    taps = [xp[:, dy:dy + H, dx:dx + W, :] for dy in range(3) for dx in range(3)]
    patches = jnp.concatenate(taps, axis=-1)                         # (B, H, W, 9C)
    return patches.reshape(B * H * W, 9 * C)


def _pool_matrix(ipb, hw):
    """(ipb, ipb*hw) block-averaging matrix: row j averages rows [j*hw, (j+1)*hw)."""
    rows = jax.lax.broadcasted_iota(jnp.int32, (ipb, ipb * hw), 0)
    cols = jax.lax.broadcasted_iota(jnp.int32, (ipb, ipb * hw), 1)
    return jnp.where(cols // hw == rows, 1.0 / hw, 0.0).astype(jnp.float32)


def _pick_images_per_block(nimg, hw, target_rows=512):
    """Largest divisor of nimg whose patch row-block stays small & sublane aligned."""
    valid = [d for d in range(1, nimg + 1)
             if nimg % d == 0 and ((d * hw) % 8 == 0 or d == nimg)]
    under = [d for d in valid if d * hw <= target_rows]
    return max(under) if under else min(valid)


# ----------------------------------------------------------------------------
# Embedding-only kernel (return_embedding=True path):
#   conv-as-matmul + bias + ReLU + global-average-pool-as-matmul.
#   Gridded over image blocks; each block writes its own output rows, so the
#   grid axis is "parallel" (shards across v7x's two TensorCores).
# ----------------------------------------------------------------------------
def _embed_kernel(patches_ref, wconv_ref, bconv_ref, pool_ref, out_ref):
    feat = jnp.dot(patches_ref[...], wconv_ref[...],
                   preferred_element_type=jnp.float32)
    feat = jnp.maximum(feat + bconv_ref[...], 0.0)                    # (ipb*hw, F)
    out_ref[...] = jnp.dot(pool_ref[...], feat,
                           preferred_element_type=jnp.float32)        # (ipb, F)


@jax.jit
def backbone_forward(x_nchw, conv_w, conv_b):
    B, C, H, W = x_nchw.shape
    hw = H * W
    F = conv_w.shape[2]
    patches = _im2col_nchw(x_nchw).astype(jnp.bfloat16)               # (B*hw, 9C) bf16
    w_flat = conv_w.reshape(9 * C, F).astype(jnp.bfloat16)

    # output block rows must equal B or be a multiple of 8 ((8,128) constraint)
    ipb = 8 if (B % 8 == 0) else B
    num_blocks = B // ipb
    blk_rows = ipb * hw
    pool_mat = _pool_matrix(ipb, hw)

    return pl.pallas_call(
        _embed_kernel,
        out_shape=jax.ShapeDtypeStruct((B, F), jnp.float32),
        grid_spec=pltpu.PrefetchScalarGridSpec(
            num_scalar_prefetch=0,
            grid=(num_blocks,),
            in_specs=[
                pl.BlockSpec((blk_rows, 9 * C), lambda m: (m, 0)),
                pl.BlockSpec((9 * C, F), lambda m: (0, 0)),
                pl.BlockSpec((1, F), lambda m: (0, 0)),
                pl.BlockSpec((ipb, blk_rows), lambda m: (0, 0)),
            ],
            out_specs=pl.BlockSpec((ipb, F), lambda m: (m, 0)),
        ),
        compiler_params=pltpu.CompilerParams(
            dimension_semantics=("parallel",)),
    )(patches, w_flat, conv_b[None, :], pool_mat)


# ----------------------------------------------------------------------------
# Fused BYOL loss kernel.
#   Grid over image row-blocks of the (online++target)-column backbone matmul;
#   pooled features accumulate in VMEM scratch; head + loss on the last step.
#
# Operand packing:
#   vec_slab (8, wd):  row0 b1(on||tg)  row1 gamma(on||tg)  row2 beta(on||tg)
#                      row3 b2(on||tg)  row4 pred_b1        row5 pred_b2 @cols[P:2P)
#                      row6 conv_b(on||tg)                  row7 zeros
#   mat_slab (*, wd):  [W1 blockdiag | W2 blockdiag | pred_W1 | pred_W2], each
#                      zero-padded to wd lanes; pred output placed in cols [P:2P)
#                      so the loss stays lane-aligned with the target proj cols.
# ----------------------------------------------------------------------------
def _byol_loss_kernel(patches_ref, wconv_ref, pool_ref, vec_ref, mat_ref,
                      out_ref, pooled_ref, *,
                      nimg, ipb, nb, two_f, wd, psz,
                      off_w2, off_pw1, off_pw2):
    step = pl.program_id(0)

    @pl.when(step == 0)
    def _():
        pooled_ref[...] = jnp.zeros_like(pooled_ref)

    vecs = vec_ref[...]                                               # (8, wd)

    # ---- backbone: bf16 MXU matmul; online feature cols [0:F), target [F:2F)
    feat = jnp.dot(patches_ref[...], wconv_ref[...],
                   preferred_element_type=jnp.float32)
    feat = jnp.maximum(feat + vecs[6:7, :two_f], 0.0)                 # (ipb*hw, 2F)

    # ---- global-average-pool as matmul (MXU), then place this block's image
    #      rows into the (nimg, 2F) accumulator with a tiny placement matmul
    #      (avoids dynamic sublane stores / relayout-heavy concatenates).
    pooled_blk = jnp.dot(pool_ref[...], feat,
                         preferred_element_type=jnp.float32)          # (ipb, 2F)
    pr = jax.lax.broadcasted_iota(jnp.int32, (nimg, ipb), 0)
    pc = jax.lax.broadcasted_iota(jnp.int32, (nimg, ipb), 1)
    place = jnp.where(pr == step * ipb + pc, 1.0, 0.0)                # (nimg, ipb)
    pooled_ref[...] += jnp.dot(place, pooled_blk,
                               preferred_element_type=jnp.float32)

    # ---- MLP head + loss, once, on the last grid step
    @pl.when(step == pl.num_programs(0) - 1)
    def _():
        pooled = pooled_ref[...]                                      # (nimg, 2F)
        b1, gamma, beta = vecs[0:1, :], vecs[1:2, :], vecs[2:3, :]
        b2, pb1, pb2 = vecs[3:4, :], vecs[4:5, :], vecs[5:6, :]
        w1 = mat_ref[0:two_f, :]                                      # (2F, wd)
        w2 = mat_ref[off_w2:off_w2 + wd, :]                           # (wd, wd)
        pw1 = mat_ref[off_pw1:off_pw1 + wd, :]                        # (wd, wd)
        pw2 = mat_ref[off_pw2:off_pw2 + wd, :]                        # (wd, wd)

        # projection layer 1 (online cols [0:Hd), target cols [Hd:2Hd))
        z = jnp.dot(pooled, w1, preferred_element_type=jnp.float32) + b1

        # BatchNorm1d (training-mode batch stats, biased var, eps=1e-5),
        # statistics segmented per view: rows [0:nb) = view1, [nb:2nb) = view2.
        rows = jax.lax.broadcasted_iota(jnp.int32, z.shape, 0)
        first = (rows < nb).astype(jnp.float32)
        second = 1.0 - first
        inv_nb = 1.0 / nb
        mu = (first * (jnp.sum(z * first, axis=0, keepdims=True) * inv_nb)
              + second * (jnp.sum(z * second, axis=0, keepdims=True) * inv_nb))
        d = z - mu
        var = (first * (jnp.sum(d * d * first, axis=0, keepdims=True) * inv_nb)
               + second * (jnp.sum(d * d * second, axis=0, keepdims=True) * inv_nb))
        a = jnp.maximum(d * jax.lax.rsqrt(var + 1e-5) * gamma + beta, 0.0)

        # projection layer 2: proj cols [0:P)=online proj, [P:2P)=target proj
        proj = jnp.dot(a, w2, preferred_element_type=jnp.float32) + b2
        # predictor (online only; pw1 rows >= P are zero): output in cols [P:2P)
        ph = jnp.maximum(jnp.dot(proj, pw1, preferred_element_type=jnp.float32) + pb1, 0.0)
        pred = jnp.dot(ph, pw2, preferred_element_type=jnp.float32) + pb2

        # loss_fn(p, t) = 2 - 2 * <l2norm(p), l2norm(t)> per row (SAME-view
        # pairing, exactly as in the provided module). pred is zero outside
        # cols [P:2P), so <pred, tgt> needs no lane shifts.
        lanes = jax.lax.broadcasted_iota(jnp.int32, proj.shape, 1)
        tmask = jnp.logical_and(lanes >= psz, lanes < 2 * psz).astype(jnp.float32)
        tgt = proj * tmask
        num = jnp.sum(pred * tgt, axis=-1, keepdims=True)
        pn2 = jnp.sum(pred * pred, axis=-1, keepdims=True)
        tn2 = jnp.sum(tgt * tgt, axis=-1, keepdims=True)
        # torch F.normalize clamps the norm at eps=1e-12; rsqrt(.. + 1e-24) is
        # equivalent for non-degenerate rows.
        cos = num * jax.lax.rsqrt(pn2 * tn2 + 1e-24)
        loss = 2.0 - 2.0 * cos                                        # (nimg, 1)
        out_ref[...] = (jnp.sum(loss) * (1.0 / nb)).reshape(1, 1)


@jax.jit
def byol_loss_forward(params, x1, x2):
    B, C, H, W = x1.shape
    hw = H * W
    F = params["conv_w"].shape[2]
    Hd = params["online_proj"]["w1"].shape[1]
    P = params["online_proj"]["w2"].shape[1]
    nimg = 2 * B
    two_f, two_hd, two_p = 2 * F, 2 * Hd, 2 * P
    wd = max(two_hd, two_p, Hd, two_f)                 # packed slab lane width

    # ---- backbone operands: views stacked along M, online/target weights along N
    patches = jnp.concatenate([_im2col_nchw(x1), _im2col_nchw(x2)],
                              axis=0).astype(jnp.bfloat16)            # (2B*hw, 9C)
    w_conv = jnp.concatenate(
        [params["conv_w"].reshape(9 * C, F),
         params["target_conv_w"].reshape(9 * C, F)], axis=1).astype(jnp.bfloat16)

    ipb = _pick_images_per_block(nimg, hw)
    num_blocks = nimg // ipb
    blk_rows = ipb * hw
    pool_mat = _pool_matrix(ipb, hw)

    # ---- packed vector slab (8, wd)
    op, tp, prd = params["online_proj"], params["target_proj"], params["predictor"]

    def row(v):
        return jnp.pad(v, (0, wd - v.shape[0]))[None, :]

    vec_slab = jnp.concatenate([
        row(jnp.concatenate([op["b1"], tp["b1"]])),
        row(jnp.concatenate([op["gamma"], tp["gamma"]])),
        row(jnp.concatenate([op["beta"], tp["beta"]])),
        row(jnp.concatenate([op["b2"], tp["b2"]])),
        row(prd["b1"]),
        row(jnp.pad(prd["b2"], (P, 0))),               # predictor out -> cols [P:2P)
        row(jnp.concatenate([params["conv_b"], params["target_conv_b"]])),
        jnp.zeros((1, wd), jnp.float32),
    ], axis=0).astype(jnp.float32)

    # ---- packed head-weight slab (block-diagonal online/target projection)
    def blkdiag(a, b):
        ra, ca = a.shape
        rb, cb = b.shape
        top = jnp.concatenate([a, jnp.zeros((ra, cb), a.dtype)], axis=1)
        bot = jnp.concatenate([jnp.zeros((rb, ca), b.dtype), b], axis=1)
        return jnp.concatenate([top, bot], axis=0)

    def pad_to(m, r, c):
        return jnp.pad(m, ((0, r - m.shape[0]), (0, c - m.shape[1])))

    r1 = _round_up(two_f, 8)
    r2 = _round_up(wd, 8)
    w1p = pad_to(blkdiag(op["w1"], tp["w1"]), r1, wd)                    # (r1, wd)
    w2p = pad_to(blkdiag(op["w2"], tp["w2"]), r2, wd)                    # (r2, wd)
    pw1p = pad_to(prd["w1"], r2, wd)                                     # rows[0:P)=pred w1
    pw2p = pad_to(jnp.pad(prd["w2"], ((0, 0), (P, 0))), r2, wd)          # cols[P:2P)=pred w2
    mat_slab = jnp.concatenate([w1p, w2p, pw1p, pw2p], axis=0).astype(jnp.float32)
    off_w2, off_pw1, off_pw2 = r1, r1 + r2, r1 + 2 * r2

    kernel = functools.partial(
        _byol_loss_kernel, nimg=nimg, ipb=ipb, nb=B, two_f=two_f, wd=wd,
        psz=P, off_w2=off_w2, off_pw1=off_pw1, off_pw2=off_pw2)

    out = pl.pallas_call(
        kernel,
        out_shape=jax.ShapeDtypeStruct((1, 1), jnp.float32),
        grid_spec=pltpu.PrefetchScalarGridSpec(
            num_scalar_prefetch=0,
            grid=(num_blocks,),
            in_specs=[
                pl.BlockSpec((blk_rows, 9 * C), lambda m: (m, 0)),     # patches (pipelined)
                pl.BlockSpec((9 * C, two_f), lambda m: (0, 0)),        # conv weights
                pl.BlockSpec((ipb, blk_rows), lambda m: (0, 0)),       # pool matrix
                pl.BlockSpec((8, wd), lambda m: (0, 0)),               # vector slab
                pl.BlockSpec((mat_slab.shape[0], wd), lambda m: (0, 0)),  # weight slab
            ],
            out_specs=pl.BlockSpec((1, 1), lambda m: (0, 0)),
            scratch_shapes=[pltpu.VMEM((nimg, two_f), jnp.float32)],
        ),
        # Grid axis carries the pooled accumulator -> must be "arbitrary".
        compiler_params=pltpu.CompilerParams(
            dimension_semantics=("arbitrary",)),
    )(patches, w_conv, pool_mat, vec_slab, mat_slab)
    return out[0, 0]


# ----------------------------------------------------------------------------
# Parameter init (deterministic, synthetic), EMA update, and forward dispatch.
# ----------------------------------------------------------------------------
def init_params(key, in_channels=4, in_features=32, projection_size=16,
                projection_hidden_size=64):
    ks = jax.random.split(key, 8)

    def lin_w(k, fan_in, fan_out):
        bound = 1.0 / jnp.sqrt(jnp.float32(fan_in))
        return jax.random.uniform(k, (fan_in, fan_out), jnp.float32, -bound, bound)

    conv_w = jax.random.normal(ks[0], (9, in_channels, in_features), jnp.float32) * 0.1
    conv_b = jnp.zeros((in_features,), jnp.float32)
    online_proj = dict(
        w1=lin_w(ks[1], in_features, projection_hidden_size),
        b1=jnp.zeros((projection_hidden_size,), jnp.float32),
        gamma=jnp.ones((projection_hidden_size,), jnp.float32),
        beta=jnp.zeros((projection_hidden_size,), jnp.float32),
        w2=lin_w(ks[2], projection_hidden_size, projection_size),
        b2=jnp.zeros((projection_size,), jnp.float32),
    )
    predictor = dict(
        w1=lin_w(ks[3], projection_size, projection_hidden_size),
        b1=jnp.zeros((projection_hidden_size,), jnp.float32),
        w2=lin_w(ks[4], projection_hidden_size, projection_size),
        b2=jnp.zeros((projection_size,), jnp.float32),
    )
    params = dict(conv_w=conv_w, conv_b=conv_b,
                  online_proj=online_proj, predictor=predictor)
    # target_model = copy.deepcopy(online_model)  -> identical params at init
    params["target_conv_w"] = conv_w
    params["target_conv_b"] = conv_b
    params["target_proj"] = jax.tree_util.tree_map(lambda x: x, online_proj)
    return params


def update_moving_average(params, decay=0.99):
    # EMA.update_average: old * decay + (1 - decay) * new  (host-side param update).
    new_tp = jax.tree_util.tree_map(
        lambda old, new: old * decay + (1.0 - decay) * new,
        params["target_proj"], params["online_proj"])
    params = dict(params)
    params["target_proj"] = new_tp
    params["target_conv_w"] = params["target_conv_w"] * decay + (1.0 - decay) * params["conv_w"]
    params["target_conv_b"] = params["target_conv_b"] * decay + (1.0 - decay) * params["conv_b"]
    return params


def byol_forward(params, x1, x2=None, return_embedding=False):
    if return_embedding or x2 is None:
        # online_model(x1, return_embedding=True) -> backbone embedding
        return backbone_forward(x1, params["conv_w"], params["conv_b"])
    # Target branch is value-identical to torch.no_grad()/detach in the forward pass.
    # TODO(synk): gradients through the fused kernel would need a custom VJP with
    # stop_gradient on the target branch; only the forward pass is implemented here.
    return byol_loss_forward(params, x1, x2)

# TODO(synk): BatchNorm running-statistic buffers are not tracked (forward math
# uses training-mode batch stats, matching PyTorch's default forward behaviour).


if __name__ == "__main__":
    B, C, H, W = 2, 4, 16, 16
    key = jax.random.PRNGKey(0)
    k1, k2 = jax.random.split(key)
    x1 = jax.random.normal(k1, (B, C, H, W), jnp.float32)
    x2 = jax.random.normal(k2, (B, C, H, W), jnp.float32)

    params = init_params(jax.random.PRNGKey(42),
                         in_channels=C, in_features=32,
                         projection_size=16, projection_hidden_size=64)

    loss = byol_forward(params, x1, x2)                      # fused loss path (1 kernel)
    jax.block_until_ready(loss)

    emb = byol_forward(params, x1, return_embedding=True)    # embedding path
    jax.block_until_ready(emb)

    params = update_moving_average(params)                   # host-side EMA update

    print("KERNEL_OK")
</pallas_src>

<mosaic_0001>
module attributes {stable_mosaic.version = 11 : i64} {
  func.func @_byol_loss_kernel(%arg0: i32, %arg1: memref<512x36xbf16, #tpu.memory_space<vmem>>, %arg2: memref<36x64xbf16, #tpu.memory_space<vmem>>, %arg3: memref<2x512xf32, #tpu.memory_space<vmem>>, %arg4: memref<8x128xf32, #tpu.memory_space<vmem>>, %arg5: memref<448x128xf32, #tpu.memory_space<vmem>>, %arg6: memref<1x1xf32, #tpu.memory_space<vmem>>, %arg7: memref<4x64xf32, #tpu.memory_space<vmem>>) attributes {dimension_semantics = [#tpu.dimension_semantics<arbitrary>], iteration_bounds = array<i64: 2>, scalar_prefetch = 0 : i64, scratch_operands = 1 : i64, tpu.core_type = #tpu.core_type<tc>, window_params = [{transform_indices = @transform_0, window_bounds = array<i64: 512, 36>}, {pipeline_mode = #tpu.pipeline_mode<synchronous>, transform_indices = @transform_1, window_bounds = array<i64: 36, 64>}, {pipeline_mode = #tpu.pipeline_mode<synchronous>, transform_indices = @transform_2, window_bounds = array<i64: 2, 512>}, {pipeline_mode = #tpu.pipeline_mode<synchronous>, transform_indices = @transform_3, window_bounds = array<i64: 8, 128>}, {pipeline_mode = #tpu.pipeline_mode<synchronous>, transform_indices = @transform_4, window_bounds = array<i64: 448, 128>}, {pipeline_mode = #tpu.pipeline_mode<synchronous>, transform_indices = @transform_5, window_bounds = array<i64: 1, 1>}]} {
    %c0_i32 = arith.constant 0 : i32
    %0 = arith.cmpi eq, %arg0, %c0_i32 : i32
    %1 = arith.extui %0 : i1 to i32
    %c0_i32_0 = arith.constant 0 : i32
    %2 = arith.cmpi ne, %1, %c0_i32_0 : i32
    scf.if %2 {
      %cst_18 = arith.constant 0.000000e+00 : f32
      %30 = vector.broadcast %cst_18 : f32 to vector<4x64xf32>
      %c0_19 = arith.constant 0 : index
      %c0_20 = arith.constant 0 : index
      %31 = vector.load %arg7[%c0_19, %c0_20] : memref<4x64xf32, #tpu.memory_space<vmem>>, vector<4x64xf32>
      tpu.vector_store %arg7[%c0_19, %c0_20], %30 {strides = array<i32>} : memref<4x64xf32, #tpu.memory_space<vmem>>, vector<4x64xf32>,
    } else {
    }
    %c0 = arith.constant 0 : index
    %c0_1 = arith.constant 0 : index
    %3 = vector.load %arg4[%c0, %c0_1] : memref<8x128xf32, #tpu.memory_space<vmem>>, vector<8x128xf32>
    %c0_2 = arith.constant 0 : index
    %c0_3 = arith.constant 0 : index
    %4 = vector.load %arg1[%c0_2, %c0_3] : memref<512x36xbf16, #tpu.memory_space<vmem>>, vector<512x36xbf16>
    %c0_4 = arith.constant 0 : index
    %c0_5 = arith.constant 0 : index
    %5 = vector.load %arg2[%c0_4, %c0_5] : memref<36x64xbf16, #tpu.memory_space<vmem>>, vector<36x64xbf16>
    %cst = arith.constant dense<0.000000e+00> : vector<512x64xf32>
    %6 = tpu.matmul %4, %5, %cst {dimension_numbers = #tpu.dot_dimension_numbers<[1], [0], [0], [1], [0, 0, 1, 1], [], []>} : vector<512x36xbf16>, vector<36x64xbf16>, vector<512x64xf32> -> vector<512x64xf32>
    %7 = vector.extract_strided_slice %3 {offsets = [6, 0], sizes = [1, 64], strides = [1, 1]} : vector<8x128xf32> to vector<1x64xf32>
    %8 = vector.broadcast %7 : vector<1x64xf32> to vector<512x64xf32>
    %9 = arith.addf %6, %8 : vector<512x64xf32>
    %cst_6 = arith.constant 0.000000e+00 : f32
    %10 = vector.broadcast %cst_6 : f32 to vector<512x64xf32>
    %11 = arith.maximumf %9, %10 : vector<512x64xf32>
    %c0_7 = arith.constant 0 : index
    %c0_8 = arith.constant 0 : index
    %12 = vector.load %arg3[%c0_7, %c0_8] : memref<2x512xf32, #tpu.memory_space<vmem>>, vector<2x512xf32>
    %cst_9 = arith.constant dense<0.000000e+00> : vector<2x64xf32>
    %13 = tpu.matmul %12, %11, %cst_9 {dimension_numbers = #tpu.dot_dimension_numbers<[1], [0], [0], [1], [0, 0, 1, 1], [], []>} : vector<2x512xf32>, vector<512x64xf32>, vector<2x64xf32> -> vector<2x64xf32>
    %14 = tpu.iota {dimensions = array<i32: 0>} : vector<4x2xi32>
    %15 = tpu.iota {dimensions = array<i32: 1>} : vector<4x2xi32>
    %c2_i32 = arith.constant 2 : i32
    %16 = arith.muli %arg0, %c2_i32 : i32
    %17 = vector.broadcast %16 : i32 to vector<4x2xi32>
    %18 = arith.addi %17, %15 : vector<4x2xi32>
    %19 = arith.cmpi eq, %14, %18 : vector<4x2xi32>
    %cst_10 = arith.constant 1.000000e+00 : f32
    %cst_11 = arith.constant 0.000000e+00 : f32
    %20 = vector.broadcast %cst_10 : f32 to vector<4x2xf32>
    %21 = vector.broadcast %cst_11 : f32 to vector<4x2xf32>
    %22 = arith.select %19, %20, %21 : vector<4x2xi1>, vector<4x2xf32>
    %c0_12 = arith.constant 0 : index
    %c0_13 = arith.constant 0 : index
    %23 = vector.load %arg7[%c0_12, %c0_13] : memref<4x64xf32, #tpu.memory_space<vmem>>, vector<4x64xf32>
    %cst_14 = arith.constant dense<0.000000e+00> : vector<4x64xf32>
    %24 = tpu.matmul %22, %13, %cst_14 {dimension_numbers = #tpu.dot_dimension_numbers<[1], [0], [0], [1], [0, 0, 1, 1], [], []>} : vector<4x2xf32>, vector<2x64xf32>, vector<4x64xf32> -> vector<4x64xf32>
    %25 = arith.addf %23, %24 : vector<4x64xf32>
    %c0_15 = arith.constant 0 : index
    %c0_16 = arith.constant 0 : index
    %26 = vector.load %arg7[%c0_15, %c0_16] : memref<4x64xf32, #tpu.memory_space<vmem>>, vector<4x64xf32>
    tpu.vector_store %arg7[%c0_15, %c0_16], %25 {strides = array<i32>} : memref<4x64xf32, #tpu.memory_space<vmem>>, vector<4x64xf32>,
    %c1_i32 = arith.constant 1 : i32
    %27 = arith.cmpi eq, %arg0, %c1_i32 : i32
    %28 = arith.extui %27 : i1 to i32
    %c0_i32_17 = arith.constant 0 : i32
    %29 = arith.cmpi ne, %28, %c0_i32_17 : i32
    scf.if %29 {
      %c0_18 = arith.constant 0 : index
      %c0_19 = arith.constant 0 : index
      %30 = vector.load %arg7[%c0_18, %c0_19] : memref<4x64xf32, #tpu.memory_space<vmem>>, vector<4x64xf32>
      %31 = vector.extract_strided_slice %3 {offsets = [0, 0], sizes = [1, 128], strides = [1, 1]} : vector<8x128xf32> to vector<1x128xf32>
      %32 = vector.extract_strided_slice %3 {offsets = [1, 0], sizes = [1, 128], strides = [1, 1]} : vector<8x128xf32> to vector<1x128xf32>
      %33 = vector.extract_strided_slice %3 {offsets = [2, 0], sizes = [1, 128], strides = [1, 1]} : vector<8x128xf32> to vector<1x128xf32>
      %34 = vector.extract_strided_slice %3 {offsets = [3, 0], sizes = [1, 128], strides = [1, 1]} : vector<8x128xf32> to vector<1x128xf32>
      %35 = vector.extract_strided_slice %3 {offsets = [4, 0], sizes = [1, 128], strides = [1, 1]} : vector<8x128xf32> to vector<1x128xf32>
      %36 = vector.extract_strided_slice %3 {offsets = [5, 0], sizes = [1, 128], strides = [1, 1]} : vector<8x128xf32> to vector<1x128xf32>
      %c0_20 = arith.constant 0 : index
      %c0_21 = arith.constant 0 : index
      %37 = vector.load %arg5[%c0_20, %c0_21] : memref<448x128xf32, #tpu.memory_space<vmem>>, vector<64x128xf32>
      %c64 = arith.constant 64 : index
      %c0_22 = arith.constant 0 : index
      %38 = vector.load %arg5[%c64, %c0_22] : memref<448x128xf32, #tpu.memory_space<vmem>>, vector<128x128xf32>
      %c192 = arith.constant 192 : index
      %c0_23 = arith.constant 0 : index
      %39 = vector.load %arg5[%c192, %c0_23] : memref<448x128xf32, #tpu.memory_space<vmem>>, vector<128x128xf32>
      %c320 = arith.constant 320 : index
      %c0_24 = arith.constant 0 : index
      %40 = vector.load %arg5[%c320, %c0_24] : memref<448x128xf32, #tpu.memory_space<vmem>>, vector<128x128xf32>
      %cst_25 = arith.constant dense<0.000000e+00> : vector<4x128xf32>
      %41 = tpu.matmul %30, %37, %cst_25 {dimension_numbers = #tpu.dot_dimension_numbers<[1], [0], [0], [1], [0, 0, 1, 1], [], []>} : vector<4x64xf32>, vector<64x128xf32>, vector<4x128xf32> -> vector<4x128xf32>
      %42 = vector.broadcast %31 : vector<1x128xf32> to vector<4x128xf32>
      %43 = arith.addf %41, %42 : vector<4x128xf32>
      %44 = tpu.iota {dimensions = array<i32: 0>} : vector<4x128xi32>
      %c2_i32_26 = arith.constant 2 : i32
      %45 = vector.broadcast %c2_i32_26 : i32 to vector<4x128xi32>
      %46 = arith.cmpi slt, %44, %45 : vector<4x128xi32>
      %47 = arith.extui %46 : vector<4x128xi1> to vector<4x128xi32>
      %48 = arith.sitofp %47 : vector<4x128xi32> to vector<4x128xf32>
      %cst_27 = arith.constant 1.000000e+00 : f32
      %49 = vector.broadcast %cst_27 : f32 to vector<4x128xf32>
      %50 = arith.subf %49, %48 : vector<4x128xf32>
      %51 = arith.mulf %43, %48 : vector<4x128xf32>
      %cst_28 = arith.constant dense<0.000000e+00> : vector<128xf32>
      %52 = vector.multi_reduction <add>, %51, %cst_28 [0] : vector<4x128xf32> to vector<128xf32>
      %53 = vector.shape_cast %52 : vector<128xf32> to vector<1x128xf32>
      %cst_29 = arith.constant 5.000000e-01 : f32
      %54 = vector.broadcast %cst_29 : f32 to vector<1x128xf32>
      %55 = arith.mulf %53, %54 : vector<1x128xf32>
      %56 = vector.broadcast %55 : vector<1x128xf32> to vector<4x128xf32>
      %57 = arith.mulf %48, %56 : vector<4x128xf32>
      %58 = arith.mulf %43, %50 : vector<4x128xf32>
      %cst_30 = arith.constant dense<0.000000e+00> : vector<128xf32>
      %59 = vector.multi_reduction <add>, %58, %cst_30 [0] : vector<4x128xf32> to vector<128xf32>
      %60 = vector.shape_cast %59 : vector<128xf32> to vector<1x128xf32>
      %cst_31 = arith.constant 5.000000e-01 : f32
      %61 = vector.broadcast %cst_31 : f32 to vector<1x128xf32>
      %62 = arith.mulf %60, %61 : vector<1x128xf32>
      %63 = vector.broadcast %62 : vector<1x128xf32> to vector<4x128xf32>
      %64 = arith.mulf %50, %63 : vector<4x128xf32>
      %65 = arith.addf %57, %64 : vector<4x128xf32>
      %66 = arith.subf %43, %65 : vector<4x128xf32>
      %67 = arith.mulf %66, %66 : vector<4x128xf32>
      %68 = arith.mulf %67, %48 : vector<4x128xf32>
      %cst_32 = arith.constant dense<0.000000e+00> : vector<128xf32>
      %69 = vector.multi_reduction <add>, %68, %cst_32 [0] : vector<4x128xf32> to vector<128xf32>
      %70 = vector.shape_cast %69 : vector<128xf32> to vector<1x128xf32>
      %cst_33 = arith.constant 5.000000e-01 : f32
      %71 = vector.broadcast %cst_33 : f32 to vector<1x128xf32>
      %72 = arith.mulf %70, %71 : vector<1x128xf32>
      %73 = vector.broadcast %72 : vector<1x128xf32> to vector<4x128xf32>
      %74 = arith.mulf %48, %73 : vector<4x128xf32>
      %75 = arith.mulf %66, %66 : vector<4x128xf32>
      %76 = arith.mulf %75, %50 : vector<4x128xf32>
      %cst_34 = arith.constant dense<0.000000e+00> : vector<128xf32>
      %77 = vector.multi_reduction <add>, %76, %cst_34 [0] : vector<4x128xf32> to vector<128xf32>
      %78 = vector.shape_cast %77 : vector<128xf32> to vector<1x128xf32>
      %cst_35 = arith.constant 5.000000e-01 : f32
      %79 = vector.broadcast %cst_35 : f32 to vector<1x128xf32>
      %80 = arith.mulf %78, %79 : vector<1x128xf32>
      %81 = vector.broadcast %80 : vector<1x128xf32> to vector<4x128xf32>
      %82 = arith.mulf %50, %81 : vector<4x128xf32>
      %83 = arith.addf %74, %82 : vector<4x128xf32>
      %cst_36 = arith.constant 9.99999974E-6 : f32
      %84 = vector.broadcast %cst_36 : f32 to vector<4x128xf32>
      %85 = arith.addf %83, %84 : vector<4x128xf32>
      %86 = math.rsqrt %85 : vector<4x128xf32>
      %87 = arith.mulf %66, %86 : vector<4x128xf32>
      %88 = vector.broadcast %32 : vector<1x128xf32> to vector<4x128xf32>
      %89 = arith.mulf %87, %88 : vector<4x128xf32>
      %90 = vector.broadcast %33 : vector<1x128xf32> to vector<4x128xf32>
      %91 = arith.addf %89, %90 : vector<4x128xf32>
      %cst_37 = arith.constant 0.000000e+00 : f32
      %92 = vector.broadcast %cst_37 : f32 to vector<4x128xf32>
      %93 = arith.maximumf %91, %92 : vector<4x128xf32>
      %cst_38 = arith.constant dense<0.000000e+00> : vector<4x128xf32>
      %94 = tpu.matmul %93, %38, %cst_38 {dimension_numbers = #tpu.dot_dimension_numbers<[1], [0], [0], [1], [0, 0, 1, 1], [], []>} : vector<4x128xf32>, vector<128x128xf32>, vector<4x128xf32> -> vector<4x128xf32>
      %95 = vector.broadcast %34 : vector<1x128xf32> to vector<4x128xf32>
      %96 = arith.addf %94, %95 : vector<4x128xf32>
      %cst_39 = arith.constant dense<0.000000e+00> : vector<4x128xf32>
      %97 = tpu.matmul %96, %39, %cst_39 {dimension_numbers = #tpu.dot_dimension_numbers<[1], [0], [0], [1], [0, 0, 1, 1], [], []>} : vector<4x128xf32>, vector<128x128xf32>, vector<4x128xf32> -> vector<4x128xf32>
      %98 = vector.broadcast %35 : vector<1x128xf32> to vector<4x128xf32>
      %99 = arith.addf %97, %98 : vector<4x128xf32>
      %cst_40 = arith.constant 0.000000e+00 : f32
      %100 = vector.broadcast %cst_40 : f32 to vector<4x128xf32>
      %101 = arith.maximumf %99, %100 : vector<4x128xf32>
      %cst_41 = arith.constant dense<0.000000e+00> : vector<4x128xf32>
      %102 = tpu.matmul %101, %40, %cst_41 {dimension_numbers = #tpu.dot_dimension_numbers<[1], [0], [0], [1], [0, 0, 1, 1], [], []>} : vector<4x128xf32>, vector<128x128xf32>, vector<4x128xf32> -> vector<4x128xf32>
      %103 = vector.broadcast %36 : vector<1x128xf32> to vector<4x128xf32>
      %104 = arith.addf %102, %103 : vector<4x128xf32>
      %105 = tpu.iota {dimensions = array<i32: 1>} : vector<4x128xi32>
      %c16_i32 = arith.constant 16 : i32
      %106 = vector.broadcast %c16_i32 : i32 to vector<4x128xi32>
      %107 = arith.cmpi sge, %105, %106 : vector<4x128xi32>
      %c32_i32 = arith.constant 32 : i32
      %108 = vector.broadcast %c32_i32 : i32 to vector<4x128xi32>
      %109 = arith.cmpi slt, %105, %108 : vector<4x128xi32>
      %110 = arith.andi %107, %109 : vector<4x128xi1>
      %111 = arith.extui %110 : vector<4x128xi1> to vector<4x128xi32>
      %112 = arith.sitofp %111 : vector<4x128xi32> to vector<4x128xf32>
      %113 = arith.mulf %96, %112 : vector<4x128xf32>
      %114 = arith.mulf %104, %113 : vector<4x128xf32>
      %cst_42 = arith.constant dense<0.000000e+00> : vector<4xf32>
      %115 = vector.multi_reduction <add>, %114, %cst_42 [1] : vector<4x128xf32> to vector<4xf32>
      %116 = vector.shape_cast %115 : vector<4xf32> to vector<4x1xf32>
      %117 = arith.mulf %104, %104 : vector<4x128xf32>
      %cst_43 = arith.constant dense<0.000000e+00> : vector<4xf32>
      %118 = vector.multi_reduction <add>, %117, %cst_43 [1] : vector<4x128xf32> to vector<4xf32>
      %119 = vector.shape_cast %118 : vector<4xf32> to vector<4x1xf32>
      %120 = arith.mulf %113, %113 : vector<4x128xf32>
      %cst_44 = arith.constant dense<0.000000e+00> : vector<4xf32>
      %121 = vector.multi_reduction <add>, %120, %cst_44 [1] : vector<4x128xf32> to vector<4xf32>
      %122 = vector.shape_cast %121 : vector<4xf32> to vector<4x1xf32>
      %123 = arith.mulf %119, %122 : vector<4x1xf32>
      %cst_45 = arith.constant 1.000000e-24 : f32
      %124 = vector.broadcast %cst_45 : f32 to vector<4x1xf32>
      %125 = arith.addf %123, %124 : vector<4x1xf32>
      %126 = math.rsqrt %125 : vector<4x1xf32>
      %127 = arith.mulf %116, %126 : vector<4x1xf32>
      %cst_46 = arith.constant 2.000000e+00 : f32
      %128 = vector.broadcast %cst_46 : f32 to vector<4x1xf32>
      %129 = arith.mulf %128, %127 : vector<4x1xf32>
      %cst_47 = arith.constant 2.000000e+00 : f32
      %130 = vector.broadcast %cst_47 : f32 to vector<4x1xf32>
      %131 = arith.subf %130, %129 : vector<4x1xf32>
      %132 = vector.shape_cast %131 : vector<4x1xf32> to vector<1x4x1xf32>
      %cst_48 = arith.constant dense<0.000000e+00> : vector<1xf32>
      %133 = vector.multi_reduction <add>, %132, %cst_48 [1, 2] : vector<1x4x1xf32> to vector<1xf32>
      %134 = vector.shape_cast %133 : vector<1xf32> to vector<1x1x1xf32>
      %135 = vector.extract %134[0, 0, 0] : f32 from vector<1x1x1xf32>
      %cst_49 = arith.constant 5.000000e-01 : f32
      %136 = arith.mulf %135, %cst_49 : f32
      %137 = vector.broadcast %136 : f32 to vector<1x1xf32>
      %c0_50 = arith.constant 0 : index
      %c0_51 = arith.constant 0 : index
      %138 = vector.load %arg6[%c0_50, %c0_51] : memref<1x1xf32, #tpu.memory_space<vmem>>, vector<1x1xf32>
      tpu.vector_store %arg6[%c0_50, %c0_51], %137 {strides = array<i32>} : memref<1x1xf32, #tpu.memory_space<vmem>>, vector<1x1xf32>,
    } else {
    }
    return
  }
  func.func @transform_0(%arg0: i32) -> (i32, i32) {
    %c0_i32 = arith.constant 0 : i32
    %c0_i32_0 = arith.constant 0 : i32
    return %arg0, %c0_i32 : i32, i32
  }
  func.func @transform_1(%arg0: i32) -> (i32, i32) {
    %c0_i32 = arith.constant 0 : i32
    %c0_i32_0 = arith.constant 0 : i32
    %c0_i32_1 = arith.constant 0 : i32
    return %c0_i32, %c0_i32_0 : i32, i32
  }
  func.func @transform_2(%arg0: i32) -> (i32, i32) {
    %c0_i32 = arith.constant 0 : i32
    %c0_i32_0 = arith.constant 0 : i32
    %c0_i32_1 = arith.constant 0 : i32
    return %c0_i32, %c0_i32_0 : i32, i32
  }
  func.func @transform_3(%arg0: i32) -> (i32, i32) {
    %c0_i32 = arith.constant 0 : i32
    %c0_i32_0 = arith.constant 0 : i32
    %c0_i32_1 = arith.constant 0 : i32
    return %c0_i32, %c0_i32_0 : i32, i32
  }
  func.func @transform_4(%arg0: i32) -> (i32, i32) {
    %c0_i32 = arith.constant 0 : i32
    %c0_i32_0 = arith.constant 0 : i32
    %c0_i32_1 = arith.constant 0 : i32
    return %c0_i32, %c0_i32_0 : i32, i32
  }
  func.func @transform_5(%arg0: i32) -> (i32, i32) {
    %c0_i32 = arith.constant 0 : i32
    %c0_i32_0 = arith.constant 0 : i32
    %c0_i32_1 = arith.constant 0 : i32
    return %c0_i32, %c0_i32_0 : i32, i32
  }
}

</mosaic_0001>

<bundles_post_ra>
// kernel: byol_loss_forward.1
= control target key start
LH: loop header
LB: loop body
LE: loop exit
PB: predicated region body
PF: predicated region fallthrough
CT: control target
= control target key end

     0   :  { %10 = vsyncpa [#allocation4], 0  ;;  %s2433_s18 = smov 0   ;;  %s2932_s0 = inlined_call_operand.vmem [shape: bf16[1024,36], index: 0, kind: input, shape index: {}]   ;;  %s2933_s1 = inlined_call_operand.vmem [shape: bf16[36,64], index: 1, kind: input, shape index: {}]   ;;  %s2934_s2 = inlined_call_operand.vmem [shape: f32[2,512], index: 2, kind: input, shape index: {}]   ;;  %s2935_s3 = inlined_call_operand.vmem [shape: f32[8,128], index: 3, kind: input, shape index: {}]   ;;  %s2936_s4 = inlined_call_operand.vmem [shape: f32[448,128], index: 4, kind: input, shape index: {}]   ;;  %s2937_s5 = inlined_call_operand.hbm [shape: f32[1,1], index: 5, kind: output, shape index: {}]  }
   0x1 LB: > { %s2439_s19 = sadd.s32 4294967295, %s2393_s18   ;;  %p1689_p0 = scmp.ge.s32.totalorder %s2393_s18, 1  ;;  %s2393_s18 = sphi %s2433_s18, %s16_s18  }
   0x2   : > { %p184_p1 = scmp.lt.s32.totalorder %s2393_s18, 3 }
   0x4   : > { %p185_p2 = pnand %p1689_p0, %p184_p1 }
   0x5   : > { %s1690_s20 = sshll.u32 (!%p185_p2), %s2439_s19, 6  ;;  %p1692_p4 = scmp.ne.s32.totalorder (!%p185_p2), %s2439_s19, 0 }
   0x6   : > { %188 = sbr.rel (%p185_p2) target bundleno = 2119 (0x847), region = 40  ;;  %p208_p3 = scmp.lt.s32.totalorder (!%p185_p2), %s1690_s20, 127 }
   0xd   : > { %s2939_s20 = smov (!%p208_p3, %s1690_s20), 127  ;;  %217 = sbr.rel (%p1692_p4) target bundleno = 20 (0x14), region = 44 }
   0xe   : > { %s1691_s21 = sshll.u32 %s2939_s20, 2  ;;  %vm218_vm0 = vcmask (!%p1692_p4), 519168   ;;  %v2395_v0 = vmov (!%p1692_p4), 0.0  }
   0xf   : > { %s2447_s24 = scalar_lea.vmem %s2932_s0, %s1691_s21  ;;  %219 = vst.msk [vmem:[#allocation2] sm:$0xf] (!%p1692_p4), %vm218_vm0, %v2395_v0 }
  0x14 PF: > { %v2317_v1 = vld [vmem:[%s2933_s1] sm:$0xff]   ;;  %v2318_v2 = vld [vmem:[%s2933_s1 + $0x8] sm:$0xff]   ;;  %vm469_vm1 = vcmask 293888   ;;  %v2319_v3 = vld [vmem:[%s2933_s1 + $0x10] ss:$0 sps:$4 sm:$0x33]   ;;  %v290_v37 = vlaneseq }
  0x15   : > { %1938 = vmatprep.subr.bf16.mxu0 %v2317_v1  ;;  %v2320_v4 = vld [vmem:[%s2447_s24] sm:$0xff]   ;;  %2285 = vmatprep.subr.bf16.mxu1 %v2317_v1  ;;  %vm566_vm2 = vcmask 1041408   ;;  %v2321_v6 = vld [vmem:[%s2447_s24 + $0x8] sm:$0xff]   ;;  %v2322_v7 = vld [vmem:[%s2447_s24 + $0x10] sm:$0xff]   ;;  %v2396_v38 = vmov 1983009808  }
  0x16   : > { %1939 = vmatpush3.bf16.msra.mxu0 %v2317_v1  ;;  %2288 = vmatpush3.bf16.msra.mxu1 %v2317_v1  ;;  %v568_v5 = vsel %vm566_vm2, %v2319_v3, 0  ;;  %v2323_v8 = vld [vmem:[%s2447_s24 + $0x18] sm:$0xff]   ;;  %v2335_v9 = vld [vmem:[%s2447_s24 + $0xb0] sm:$0xff]   ;;  %v2324_v10 = vld [vmem:[%s2447_s24 + $0x20] sm:$0xff]   ;;  %v927_v39 = vunpack.c.l.s4 %v2396_v38  ;;  %v2527_v40 = vshrl.u32 %v290_v37, 7  ;;  %vm2398_vm3 = vmmov 0  }
  0x17   : > { %1940 = vmatprep.subr.bf16.mxu0 %v2318_v2  ;;  %1944 = vmatprep.mubr.msk.bf16.mxu0 %vm469_vm1, %v2320_v4  ;;  %v2337_v11 = vld [vmem:[%s2447_s24 + $0xb8] sm:$0xff]   ;;  %v2338_v12 = vld [vmem:[%s2447_s24 + $0xc0] sm:$0xff]   ;;  %v2325_v13 = vld [vmem:[%s2447_s24 + $0x28] sm:$0xff]   ;;  %s1760_s10 = sshll.u32 %s2439_s19, 1  ;;  %vm1096_vm5 = vcmask 15360   ;;  %vm1174_vm6 = vcmask 519168  }
  0x18   : > { %2286 = vmatprep.subr.bf16.mxu1 %v2318_v2  ;;  %1988 = vmatprep.mubr.msk.bf16.mxu1 %vm469_vm1, %v2335_v9  ;;  %v2326_v14 = vld [vmem:[%s2447_s24 + $0x30] sm:$0xff]   ;;  %v2340_v15 = vld [vmem:[%s2447_s24 + $0xc8] sm:$0xff]   ;;  %v2327_v17 = vld [vmem:[%s2447_s24 + $0x38] sm:$0xff]   ;;  %v928_v41 = vunpack.c.0.s8 %v927_v39  ;;  %v292_v48 = vsub.s32 6, %v2527_v40  ;;  %p1763_p5 = scmp.ne.s32.totalorder %s2439_s19, 1 }
  0x19   : > { %v2342_v16 = vld [vmem:[%s2447_s24 + $0xd0] sm:$0xff]   ;;  %v2344_v18 = vld [vmem:[%s2447_s24 + $0xd8] sm:$0xff]   ;;  %v2328_v19 = vld [vmem:[%s2447_s24 + $0x40] sm:$0xff]   ;;  %vm2400_vm7 = vmmov (!%p1763_p5), 0   ;;  %vm1241_vm8 = vcmask (!%p1763_p5), 523264   ;;  %vm1315_vm9 = vcmp.lt.s32.totalorder (!%p1763_p5), %v2527_v40, 2 }
  0x1a   : > { %1941 = vmatpush3.bf16.msra.mxu0 %v2318_v2  ;;  %2289 = vmatpush3.bf16.msra.mxu1 %v2318_v2  ;;  %v2346_v20 = vld [vmem:[%s2447_s24 + $0xe0] sm:$0xff]   ;;  %v2329_v21 = vld [vmem:[%s2447_s24 + $0x48] sm:$0xff]   ;;  %v2330_v23 = vld [vmem:[%s2447_s24 + $0x50] sm:$0xff]   ;;  %v931_v42 = vsub.s32 %v928_v41, %v2527_v40  ;;  %vm1320_vm10 = vcmask (!%p1763_p5), 1043456   ;;  %vm1625_vm14 = vcmask (!%p1763_p5), 3072   ;;  %vm1638_vm15 = vcmask (!%p1763_p5), 0  }
  0x1b   : > { %2291 = vmatprep.subr.msk.bf16.mxu0 %vm566_vm2, %v2319_v3  ;;  %2292 = vmatprep.subr.msk.bf16.mxu1 %vm566_vm2, %v2319_v3  ;;  %v2348_v22 = vld [vmem:[%s2447_s24 + $0xe8] sm:$0xff]   ;;  %v2350_v24 = vld [vmem:[%s2447_s24 + $0xf0] sm:$0xff]   ;;  %v2331_v25 = vld [vmem:[%s2447_s24 + $0x58] sm:$0xff]  }
  0x1c   : > { %v2351_v26 = vld [vmem:[%s2447_s24 + $0xf8] sm:$0xff]   ;;  %v2332_v27 = vld [vmem:[%s2447_s24 + $0x60] sm:$0xff]   ;;  %v2333_v28 = vld [vmem:[%s2447_s24 + $0x68] sm:$0xff]  }
  0x1d   : > { %v2334_v29 = vld [vmem:[%s2447_s24 + $0x70] sm:$0xff]   ;;  %v2336_v30 = vld [vmem:[%s2447_s24 + $0x78] sm:$0xff]   ;;  %v2339_v31 = vld [vmem:[%s2447_s24 + $0x80] sm:$0xff]  }
  0x1e   : > { %1943 = vmatpush3.bf16.msra.mxu0 %v568_v5  ;;  %2290 = vmatpush3.bf16.msra.mxu1 %v568_v5  ;;  %v2341_v32 = vld [vmem:[%s2447_s24 + $0x88] sm:$0xff]   ;;  %v2343_v33 = vld [vmem:[%s2447_s24 + $0x90] sm:$0xff]   ;;  %v2345_v34 = vld [vmem:[%s2447_s24 + $0x98] sm:$0xff]  }
  0x1f   : > { %v2347_v35 = vld [vmem:[%s2447_s24 + $0xa0] sm:$0xff]   ;;  %v2349_v36 = vld [vmem:[%s2447_s24 + $0xa8] sm:$0xff]  }
  0x20   : > { %v923_v43 = vld [vmem:[%s2934_s2] sm:$0xff] }
  0x21   : > { %1945 = vmatmul.mubr.msk.bf16.vlgmr.msra.gmra.mrb[0].mxu0 %vm469_vm1, %v2321_v6  ;;  %1989 = vmatmul.mubr.msk.bf16.vlgmr.msra.gmra.mrb[0].mxu1 %vm469_vm1, %v2337_v11  ;;  %v2533_v44 = vrot.slane %v923_v43, %v931_v42  ;;  %v925_v46 = vcombine.high %v923_v43, %v923_v43  ;;  %v2543_v49 = vld [vmem:[%s2935_s3] sm:$0xff] }
  0x22   : > { %1948 = vmatprep.mubr.msk.bf16.mxu0 %vm469_vm1, %v2322_v7  ;;  %1992 = vmatprep.mubr.msk.bf16.mxu1 %vm469_vm1, %v2338_v12  ;;  %v2546_v50 = vrot.slane %v2543_v49, %v292_v48 }
  0x23   : > { %v940_v45 = vcombine.high %v2533_v44, %v2533_v44  ;;  %v2537_v47 = vrot.slane %v925_v46, %v931_v42 }
  0x29   : > { %1949 = vmatmul.mubr.msk.bf16.gmra.mrb[4].mxu0 %vm469_vm1, %v2323_v8  ;;  %1993 = vmatmul.mubr.msk.bf16.gmra.mrb[4].mxu1 %vm469_vm1, %v2340_v15 }
  0x2a   : > { %1952 = vmatprep.mubr.msk.bf16.mxu0 %vm469_vm1, %v2324_v10  ;;  %1996 = vmatprep.mubr.msk.bf16.mxu1 %vm469_vm1, %v2342_v16 }
  0x31   : > { %1953 = vmatmul.mubr.msk.bf16.gmra.mrb[8].mxu0 %vm469_vm1, %v2325_v13  ;;  %1997 = vmatmul.mubr.msk.bf16.gmra.mrb[8].mxu1 %vm469_vm1, %v2344_v18 }
  0x32   : > { %1956 = vmatprep.mubr.msk.bf16.mxu0 %vm469_vm1, %v2326_v14  ;;  %2000 = vmatprep.mubr.msk.bf16.mxu1 %vm469_vm1, %v2346_v20 }
  0x39   : > { %1957 = vmatmul.mubr.msk.bf16.gmra.mrb[12].mxu0 %vm469_vm1, %v2327_v17  ;;  %2001 = vmatmul.mubr.msk.bf16.gmra.mrb[12].mxu1 %vm469_vm1, %v2348_v22 }
  0x3a   : > { %1960 = vmatprep.mubr.msk.bf16.mxu0 %vm469_vm1, %v2328_v19  ;;  %2004 = vmatprep.mubr.msk.bf16.mxu1 %vm469_vm1, %v2350_v24 }
  0x41   : > { %1961 = vmatmul.mubr.msk.bf16.gmra.mrb[16].mxu0 %vm469_vm1, %v2329_v21  ;;  %2005 = vmatmul.mubr.msk.bf16.gmra.mrb[16].mxu1 %vm469_vm1, %v2351_v26 }
  0x42   : > { %1964 = vmatprep.mubr.msk.bf16.mxu0 %vm469_vm1, %v2330_v23  ;;  %1010 = vmatprep.mubr.f32.mxu1 %v940_v45 }
  0x49   : > { %1965 = vmatmul.mubr.msk.bf16.gmra.mrb[20].mxu0 %vm469_vm1, %v2331_v25 }
  0x4a   : > { %1968 = vmatprep.mubr.msk.bf16.mxu0 %vm469_vm1, %v2332_v27 }
  0x51   : > { %1969 = vmatmul.mubr.msk.bf16.gmra.mrb[24].mxu0 %vm469_vm1, %v2333_v28 }
  0x52   : > { %1972 = vmatprep.mubr.msk.bf16.mxu0 %vm469_vm1, %v2334_v29 }
  0x59   : > { %1973 = vmatmul.mubr.msk.bf16.gmra.mrb[28].mxu0 %vm469_vm1, %v2336_v30 }
  0x5a   : > { %1976 = vmatprep.mubr.msk.bf16.mxu0 %vm469_vm1, %v2339_v31 }
  0x61   : > { %1977 = vmatmul.mubr.msk.bf16.gmra.mrb[32].mxu0 %vm469_vm1, %v2341_v32 }
  0x62   : > { %1980 = vmatprep.mubr.msk.bf16.mxu0 %vm469_vm1, %v2343_v33 }
  0x69   : > { %1981 = vmatmul.mubr.msk.bf16.gmra.mrb[36].mxu0 %vm469_vm1, %v2345_v34 }
  0x6a   : > { %1984 = vmatprep.mubr.msk.bf16.mxu0 %vm469_vm1, %v2347_v35 }
  0x71   : > { %1985 = vmatmul.mubr.msk.bf16.gmra.mrb[40].mxu0 %vm469_vm1, %v2349_v36 }
  0xf4   : > { %v1946_v51 = vpop.f32.mrb[0].mxu0  ;;  %v1990_v2 = vpop.f32.mrb[0].mxu1 }
  0xf5   : > { %v613_v52 = vadd.f32 %v1946_v51, %v2546_v50  ;;  %v604_v53 = vpop.f32.mrb[1].mxu0  ;;  %v789_v5 = vadd.f32 %v1990_v2, %v2546_v50  ;;  %v780_v6 = vpop.f32.mrb[1].mxu1 }
  0xf6   : > { %v605_v54 = vadd.f32 %v604_v53, %v2546_v50  ;;  %v1947_v55 = vpop.f32.mrb[2].mxu0  ;;  %v781_v9 = vadd.f32 %v780_v6, %v2546_v50  ;;  %v1991_v10 = vpop.f32.mrb[2].mxu1 }
  0xf7   : > { %v616_v56 = vadd.f32 %v1947_v55, %v2546_v50  ;;  %v607_v57 = vpop.f32.mrb[3].mxu0  ;;  %v861_v59 = vmax.f32 %v613_v52, 0.0  ;;  %v905_v13 = vmax.f32 %v789_v5, 0.0  ;;  %v792_v14 = vadd.f32 %v1991_v10, %v2546_v50  ;;  %v783_v15 = vpop.f32.mrb[3].mxu1 }
  0xf8   : > { %v608_v58 = vadd.f32 %v607_v57, %v2546_v50  ;;  %v859_v61 = vmax.f32 %v605_v54, 0.0  ;;  %v903_v17 = vmax.f32 %v781_v9, 0.0  ;;  %v784_v18 = vadd.f32 %v783_v15, %v2546_v50 }
  0xf9   : > { %v862_v60 = vmax.f32 %v616_v56, 0.0  ;;  %v906_v21 = vmax.f32 %v792_v14, 0.0 }
  0xfa   : > { %v860_v62 = vmax.f32 %v608_v58, 0.0  ;;  %v904_v24 = vmax.f32 %v784_v18, 0.0 }
  0xfb   : > { %v2552_v63 = vpack.c.bf16 %v862_v60, %v861_v59  ;;  %v2566_v26 = vpack.c.bf16 %v906_v21, %v905_v13 }
  0xfc   : > { %v2554_v0 = vpack.c.bf16 %v860_v62, %v859_v61  ;;  %v1950_v1 = vpop.f32.mrb[4].mxu0  ;;  %v2570_v29 = vpack.c.bf16 %v904_v24, %v903_v17  ;;  %v1994_v30 = vpop.f32.mrb[4].mxu1 }
  0xfd   : > { %v629_v3 = vadd.f32 %v1950_v1, %v2546_v50  ;;  %v620_v4 = vpop.f32.mrb[5].mxu0  ;;  %v805_v33 = vadd.f32 %v1994_v30, %v2546_v50  ;;  %v796_v34 = vpop.f32.mrb[5].mxu1 }
  0xfe   : > { %v621_v7 = vadd.f32 %v620_v4, %v2546_v50  ;;  %v1951_v8 = vpop.f32.mrb[6].mxu0  ;;  %v797_v38 = vadd.f32 %v796_v34, %v2546_v50  ;;  %v1995_v39 = vpop.f32.mrb[6].mxu1 }
  0xff   : > { %v632_v11 = vadd.f32 %v1951_v8, %v2546_v50  ;;  %v623_v12 = vpop.f32.mrb[7].mxu0  ;;  %v865_v19 = vmax.f32 %v629_v3, 0.0  ;;  %v909_v43 = vmax.f32 %v805_v33, 0.0  ;;  %v808_v45 = vadd.f32 %v1995_v39, %v2546_v50  ;;  %v799_v46 = vpop.f32.mrb[7].mxu1 }
 0x100   : > { %v624_v16 = vadd.f32 %v623_v12, %v2546_v50  ;;  %v863_v22 = vmax.f32 %v621_v7, 0.0  ;;  %v907_v51 = vmax.f32 %v797_v38, 0.0  ;;  %v800_v52 = vadd.f32 %v799_v46, %v2546_v50 }
 0x101   : > { %v866_v20 = vmax.f32 %v632_v11, 0.0  ;;  %v910_v55 = vmax.f32 %v808_v45, 0.0 }
 0x102   : > { %v864_v23 = vmax.f32 %v624_v16, 0.0  ;;  %v908_v58 = vmax.f32 %v800_v52, 0.0 }
 0x103   : > { %v2564_v25 = vpack.c.bf16 %v866_v20, %v865_v19  ;;  %v2582_v60 = vpack.c.bf16 %v910_v55, %v909_v43 }
 0x104   : > { %v2568_v27 = vpack.c.bf16 %v864_v23, %v863_v22  ;;  %v1954_v28 = vpop.f32.mrb[8].mxu0  ;;  %v2586_v1 = vpack.c.bf16 %v908_v58, %v907_v51  ;;  %v1998_v2 = vpop.f32.mrb[8].mxu1 }
 0x105   : > { %v645_v31 = vadd.f32 %v1954_v28, %v2546_v50  ;;  %v636_v32 = vpop.f32.mrb[9].mxu0  ;;  %v821_v5 = vadd.f32 %v1998_v2, %v2546_v50  ;;  %v812_v6 = vpop.f32.mrb[9].mxu1 }
 0x106   : > { %v637_v35 = vadd.f32 %v636_v32, %v2546_v50  ;;  %v1955_v36 = vpop.f32.mrb[10].mxu0  ;;  %v813_v9 = vadd.f32 %v812_v6, %v2546_v50  ;;  %v1999_v10 = vpop.f32.mrb[10].mxu1 }
 0x107   : > { %v648_v41 = vadd.f32 %v1955_v36, %v2546_v50  ;;  %v639_v42 = vpop.f32.mrb[11].mxu0  ;;  %v869_v53 = vmax.f32 %v645_v31, 0.0  ;;  %v913_v13 = vmax.f32 %v821_v5, 0.0  ;;  %v824_v14 = vadd.f32 %v1999_v10, %v2546_v50  ;;  %v815_v15 = vpop.f32.mrb[11].mxu1 }
 0x108   : > { %v640_v48 = vadd.f32 %v639_v42, %v2546_v50  ;;  %v867_v56 = vmax.f32 %v637_v35, 0.0  ;;  %v911_v17 = vmax.f32 %v813_v9, 0.0  ;;  %v816_v18 = vadd.f32 %v815_v15, %v2546_v50 }
 0x109   : > { %v870_v54 = vmax.f32 %v648_v41, 0.0  ;;  %v914_v21 = vmax.f32 %v824_v14, 0.0 }
 0x10a   : > { %v868_v57 = vmax.f32 %v640_v48, 0.0  ;;  %v912_v24 = vmax.f32 %v816_v18, 0.0 }
 0x10b   : > { %v2580_v59 = vpack.c.bf16 %v870_v54, %v869_v53  ;;  %v2598_v30 = vpack.c.bf16 %v914_v21, %v913_v13 }
 0x10c   : > { %v2584_v61 = vpack.c.bf16 %v868_v57, %v867_v56  ;;  %v1958_v62 = vpop.f32.mrb[12].mxu0  ;;  %v2602_v33 = vpack.c.bf16 %v912_v24, %v911_v17  ;;  %v2002_v34 = vpop.f32.mrb[12].mxu1 }
 0x10d   : > { %v661_v3 = vadd.f32 %v1958_v62, %v2546_v50  ;;  %v652_v4 = vpop.f32.mrb[13].mxu0  ;;  %v837_v38 = vadd.f32 %v2002_v34, %v2546_v50  ;;  %v828_v39 = vpop.f32.mrb[13].mxu1 }
 0x10e   : > { %v653_v7 = vadd.f32 %v652_v4, %v2546_v50  ;;  %v1959_v8 = vpop.f32.mrb[14].mxu0  ;;  %v829_v43 = vadd.f32 %v828_v39, %v2546_v50  ;;  %v2003_v45 = vpop.f32.mrb[14].mxu1 }
 0x10f   : > { %v664_v11 = vadd.f32 %v1959_v8, %v2546_v50  ;;  %v655_v12 = vpop.f32.mrb[15].mxu0  ;;  %v873_v19 = vmax.f32 %v661_v3, 0.0  ;;  %v917_v51 = vmax.f32 %v837_v38, 0.0  ;;  %v840_v52 = vadd.f32 %v2003_v45, %v2546_v50  ;;  %v831_v53 = vpop.f32.mrb[15].mxu1 }
 0x110   : > { %v656_v16 = vadd.f32 %v655_v12, %v2546_v50  ;;  %v871_v22 = vmax.f32 %v653_v7, 0.0  ;;  %v915_v55 = vmax.f32 %v829_v43, 0.0  ;;  %v832_v56 = vadd.f32 %v831_v53, %v2546_v50 }
 0x111   : > { %v874_v20 = vmax.f32 %v664_v11, 0.0  ;;  %v918_v62 = vmax.f32 %v840_v52, 0.0 }
 0x112   : > { %v872_v23 = vmax.f32 %v656_v16, 0.0  ;;  %v916_v4 = vmax.f32 %v832_v56, 0.0 }
 0x113   : > { %v2596_v28 = vpack.c.bf16 %v874_v20, %v873_v19  ;;  %v2612_v6 = vpack.c.bf16 %v918_v62, %v917_v51 }
 0x114   : > { %v2600_v31 = vpack.c.bf16 %v872_v23, %v871_v22  ;;  %v1962_v32 = vpop.f32.mrb[16].mxu0  ;;  %v2614_v9 = vpack.c.bf16 %v916_v4, %v915_v55  ;;  %v2006_v10 = vpop.f32.mrb[16].mxu1 }
 0x115   : > { %v677_v35 = vadd.f32 %v1962_v32, %v2546_v50  ;;  %v668_v36 = vpop.f32.mrb[17].mxu0  ;;  %v853_v13 = vadd.f32 %v2006_v10, %v2546_v50  ;;  %v844_v14 = vpop.f32.mrb[17].mxu1 }
 0x116   : > { %v669_v41 = vadd.f32 %v668_v36, %v2546_v50  ;;  %v1963_v42 = vpop.f32.mrb[18].mxu0  ;;  %v845_v17 = vadd.f32 %v844_v14, %v2546_v50  ;;  %v2007_v18 = vpop.f32.mrb[18].mxu1 }
 0x117   : > { %v680_v46 = vadd.f32 %v1963_v42, %v2546_v50  ;;  %v671_v48 = vpop.f32.mrb[19].mxu0  ;;  %v877_v57 = vmax.f32 %v677_v35, 0.0  ;;  %v921_v21 = vmax.f32 %v853_v13, 0.0  ;;  %v856_v22 = vadd.f32 %v2007_v18, %v2546_v50  ;;  %v847_v23 = vpop.f32.mrb[19].mxu1 }
 0x118   : > { %v672_v54 = vadd.f32 %v671_v48, %v2546_v50  ;;  %v875_v2 = vmax.f32 %v669_v41, 0.0  ;;  %v919_v32 = vmax.f32 %v845_v17, 0.0  ;;  %v848_v34 = vadd.f32 %v847_v23, %v2546_v50 }
 0x119   : > { %v878_v58 = vmax.f32 %v680_v46, 0.0  ;;  %v922_v38 = vmax.f32 %v856_v22, 0.0 }
 0x11a   : > { %v876_v3 = vmax.f32 %v672_v54, 0.0  ;;  %v920_v42 = vmax.f32 %v848_v34, 0.0 }
 0x11b   : > { %v2141_v5 = vpack.c.bf16 %v878_v58, %v877_v57 }
 0x11c   : > { %v2137_v7 = vpack.c.bf16 %v876_v3, %v875_v2  ;;  %v1966_v8 = vpop.f32.mrb[20].mxu0  ;;  %v2628_v48 = vpack.c.bf16 %v920_v42, %v919_v32 }
 0x11d   : > { %v693_v11 = vadd.f32 %v1966_v8, %v2546_v50  ;;  %v684_v12 = vpop.f32.mrb[21].mxu0 }
 0x11e   : > { %v685_v15 = vadd.f32 %v684_v12, %v2546_v50  ;;  %v1967_v16 = vpop.f32.mrb[22].mxu0  ;;  %2138 = vmatprep.subr.bf16.mxu1 %v2137_v7 }
 0x11f   : > { %v696_v19 = vadd.f32 %v1967_v16, %v2546_v50  ;;  %v687_v20 = vpop.f32.mrb[23].mxu0  ;;  %2140 = vmatpush3.bf16.msra.mxu1 %v2554_v0  ;;  %v881_v35 = vmax.f32 %v693_v11, 0.0  ;;  %v2626_v0 = vpack.c.bf16 %v922_v38, %v921_v21 }
 0x120   : > { %v688_v24 = vadd.f32 %v687_v20, %v2546_v50  ;;  %2142 = vmatprep.subr.bf16.mxu1 %v2141_v5  ;;  %v879_v39 = vmax.f32 %v685_v15, 0.0 }
 0x121   : > { %v882_v36 = vmax.f32 %v696_v19, 0.0 }
 0x122   : > { %v880_v41 = vmax.f32 %v688_v24, 0.0 }
 0x123   : > { %v2149_v43 = vpack.c.bf16 %v882_v36, %v881_v35  ;;  %2144 = vmatpush3.bf16.msra.mxu1 %v2552_v63 }
 0x124   : > { %v2145_v45 = vpack.c.bf16 %v880_v41, %v879_v39  ;;  %v1970_v46 = vpop.f32.mrb[24].mxu0  ;;  %v941_v39 = vcombine.high %v2537_v47, %v2537_v47 }
 0x125   : > { %v709_v51 = vadd.f32 %v1970_v46, %v2546_v50  ;;  %v700_v52 = vpop.f32.mrb[25].mxu0 }
 0x126   : > { %v701_v53 = vadd.f32 %v700_v52, %v2546_v50  ;;  %v1971_v54 = vpop.f32.mrb[26].mxu0  ;;  %2146 = vmatprep.subr.bf16.mxu1 %v2145_v45 }
 0x127   : > { %v712_v55 = vadd.f32 %v1971_v54, %v2546_v50  ;;  %v703_v56 = vpop.f32.mrb[27].mxu0  ;;  %2148 = vmatpush3.bf16.msra.mxu1 %v2568_v27  ;;  %v885_v57 = vmax.f32 %v709_v51, 0.0 }
 0x128   : > { %v704_v63 = vadd.f32 %v703_v56, %v2546_v50  ;;  %2150 = vmatprep.subr.bf16.mxu1 %v2149_v43  ;;  %v883_v62 = vmax.f32 %v701_v53, 0.0 }
 0x129   : > { %v886_v58 = vmax.f32 %v712_v55, 0.0 }
 0x12a   : > { %v884_v2 = vmax.f32 %v704_v63, 0.0 }
 0x12b   : > { %v2157_v3 = vpack.c.bf16 %v886_v58, %v885_v57  ;;  %2152 = vmatpush3.bf16.msra.mxu1 %v2564_v25 }
 0x12c   : > { %v2153_v4 = vpack.c.bf16 %v884_v2, %v883_v62  ;;  %v1974_v5 = vpop.f32.mrb[28].mxu0 }
 0x12d   : > { %v725_v7 = vadd.f32 %v1974_v5, %v2546_v50  ;;  %v716_v8 = vpop.f32.mrb[29].mxu0 }
 0x12e   : > { %v717_v10 = vadd.f32 %v716_v8, %v2546_v50  ;;  %v1975_v11 = vpop.f32.mrb[30].mxu0  ;;  %2154 = vmatprep.subr.bf16.mxu1 %v2153_v4 }
 0x12f   : > { %v728_v27 = vadd.f32 %v1975_v11, %v2546_v50  ;;  %v719_v12 = vpop.f32.mrb[31].mxu0  ;;  %2156 = vmatpush3.bf16.msra.mxu1 %v2584_v61  ;;  %v889_v14 = vmax.f32 %v725_v7, 0.0 }
 0x130   : > { %v720_v13 = vadd.f32 %v719_v12, %v2546_v50  ;;  %2158 = vmatprep.subr.bf16.mxu1 %v2157_v3  ;;  %v887_v25 = vmax.f32 %v717_v10, 0.0 }
 0x131   : > { %v890_v15 = vmax.f32 %v728_v27, 0.0 }
 0x132   : > { %v888_v16 = vmax.f32 %v720_v13, 0.0 }
 0x133   : > { %v2165_v17 = vpack.c.bf16 %v890_v15, %v889_v14  ;;  %2160 = vmatpush3.bf16.msra.mxu1 %v2580_v59  ;;  %v1095_v14 = vld [vmem:[#allocation2] sm:$0xf] }
 0x134   : > { %v2161_v18 = vpack.c.bf16 %v888_v16, %v887_v25  ;;  %v1978_v19 = vpop.f32.mrb[32].mxu0  ;;  %v1181_v16 = vld [vmem:[%s2936_s4] sm:$0xff] (!%p1763_p5) }
 0x135   : > { %v741_v20 = vadd.f32 %v1978_v19, %v2546_v50  ;;  %v732_v21 = vpop.f32.mrb[33].mxu0  ;;  %v2399_v19 = vmov (!%p1763_p5), 0.0|0.0  }
 0x136   : > { %v733_v22 = vadd.f32 %v732_v21, %v2546_v50  ;;  %2162 = vmatprep.subr.bf16.mxu1 %v2161_v18  ;;  %v1979_v23 = vpop.f32.mrb[34].mxu0  ;;  %v1183_v18 = vld [vmem:[%s2936_s4 + $0x10] sm:$0xff] (!%p1763_p5)  ;;  %2201 = vmatprep.subr.bf16.mxu0 (!%p1763_p5), %v2399_v19  ;;  %v1184_v21 = vld [vmem:[%s2936_s4 + $0x18] sm:$0xff] (!%p1763_p5) }
 0x137   : > { %v893_v61 = vmax.f32 %v741_v20, 0.0  ;;  %v744_v24 = vadd.f32 %v1979_v23, %v2546_v50  ;;  %2164 = vmatpush3.bf16.msra.mxu1 %v2600_v31  ;;  %v735_v32 = vpop.f32.mrb[35].mxu0  ;;  %v2205_v23 = vpack.c.bf16 (!%p1763_p5), %v1184_v21, %v1183_v18 }
 0x138   : > { %v736_v34 = vadd.f32 %v735_v32, %v2546_v50  ;;  %2166 = vmatprep.subr.bf16.mxu1 %v2165_v17  ;;  %v891_v59 = vmax.f32 %v733_v22, 0.0  ;;  %v1182_v17 = vld [vmem:[%s2936_s4 + $0x8] sm:$0xff] (!%p1763_p5)  ;;  %v2401_v22 = vmov (!%p1763_p5), 0.0  }
 0x139   : > { %v894_v35 = vmax.f32 %v744_v24, 0.0  ;;  %v2202_v20 = vpack.c.bf16 (!%p1763_p5), %v1182_v17, %v1181_v16  ;;  %2029 = vmatprep.mubr.msk.f32.mxu0 (!%p1763_p5), %vm2400_vm7, %v2401_v22  ;;  %v1186_v24 = vld [vmem:[%s2936_s4 + $0x28] sm:$0xff] (!%p1763_p5)  ;;  %v1765_v16 = vsel (!%p1763_p5), %vm1315_vm9, 1.0, %v2401_v22 }
 0x13a   : > { %v892_v36 = vmax.f32 %v736_v34, 0.0  ;;  %v1187_v34 = vld [vmem:[%s2936_s4 + $0x30] sm:$0xff] (!%p1763_p5)  ;;  %v1318_v18 = vsub.f32 (!%p1763_p5), 1.0, %v1765_v16 }
 0x13b   : > { %v2175_v38 = vpack.c.bf16 %v894_v35, %v893_v61  ;;  %2168 = vmatpush3.bf16.msra.mxu1 %v2596_v28  ;;  %2203 = vmatpush3.bf16.msra.mxu0 (!%p1763_p5), %v2202_v20  ;;  %v1185_v61 = vld [vmem:[%s2936_s4 + $0x20] sm:$0xff] (!%p1763_p5)  ;;  %v1188_v35 = vld [vmem:[%s2936_s4 + $0x38] sm:$0xff] (!%p1763_p5) }
 0x13c   : > { %v2171_v41 = vpack.c.bf16 %v892_v36, %v891_v59  ;;  %v1982_v42 = vpop.f32.mrb[36].mxu0  ;;  %2170 = vmatprep.subr.bf16.mxu1 %v2586_v1  ;;  %2204 = vmatprep.subr.bf16.mxu0 (!%p1763_p5), %v2399_v19  ;;  %v2208_v32 = vpack.c.bf16 (!%p1763_p5), %v1186_v24, %v1185_v61  ;;  %v2211_v59 = vpack.c.bf16 (!%p1763_p5), %v1188_v35, %v1187_v34 }
 0x13d   : > { %v757_v43 = vadd.f32 %v1982_v42, %v2546_v50  ;;  %v748_v31 = vpop.f32.mrb[37].mxu0  ;;  %v1191_v42 = vld [vmem:[%s2936_s4 + $0x50] sm:$0xff] (!%p1763_p5) }
 0x13e   : > { %v749_v45 = vadd.f32 %v748_v31, %v2546_v50  ;;  %v1983_v46 = vpop.f32.mrb[38].mxu0  ;;  %1011 = vmatmul.mubr.f32.vlgmr.msra.gmra.mrb[20].mxu1 %v2533_v44 }
 0x13f   : > { %v897_v51 = vmax.f32 %v757_v43, 0.0  ;;  %v760_v52 = vadd.f32 %v1983_v46, %v2546_v50  ;;  %2172 = vmatpush3.bf16.msra.mxu1 %v2171_v41  ;;  %v751_v28 = vpop.f32.mrb[39].mxu0  ;;  %1080 = vmatprep.mubr.f32.mxu1 %v941_v39  ;;  %v1190_v39 = vld [vmem:[%s2936_s4 + $0x48] sm:$0xff] (!%p1763_p5)  ;;  %v1192_v43 = vld [vmem:[%s2936_s4 + $0x58] sm:$0xff] (!%p1763_p5) }
 0x140   : > { %v752_v53 = vadd.f32 %v751_v28, %v2546_v50  ;;  %2174 = vmatprep.subr.bf16.mxu1 %v2582_v60  ;;  %v895_v1 = vmax.f32 %v749_v45, 0.0  ;;  %2206 = vmatpush3.bf16.msra.mxu0 (!%p1763_p5), %v2205_v23  ;;  %v2217_v31 = vpack.c.bf16 (!%p1763_p5), %v1192_v43, %v1191_v42  ;;  %v1193_v45 = vld [vmem:[%s2936_s4 + $0x60] sm:$0xff] (!%p1763_p5)  ;;  %v1194_v46 = vld [vmem:[%s2936_s4 + $0x68] sm:$0xff] (!%p1763_p5)  ;;  %v1196_v28 = vld [vmem:[%s2936_s4 + $0x78] sm:$0xff] (!%p1763_p5) }
 0x141   : > { %v898_v54 = vmax.f32 %v760_v52, 0.0  ;;  %2207 = vmatprep.subr.bf16.mxu0 (!%p1763_p5), %v2399_v19  ;;  %v1195_v52 = vld [vmem:[%s2936_s4 + $0x70] sm:$0xff] (!%p1763_p5) }
 0x142   : > { %v896_v55 = vmax.f32 %v752_v53, 0.0  ;;  %v2223_v53 = vpack.c.bf16 (!%p1763_p5), %v1196_v28, %v1195_v52 }
 0x143   : > { %v2183_v56 = vpack.c.bf16 %v898_v54, %v897_v51  ;;  %2176 = vmatpush3.bf16.msra.mxu1 %v2175_v38  ;;  %v1189_v38 = vld [vmem:[%s2936_s4 + $0x40] sm:$0xff] (!%p1763_p5)  ;;  %v2220_v51 = vpack.c.bf16 (!%p1763_p5), %v1194_v46, %v1193_v45 }
 0x144   : > { %v2179_v63 = vpack.c.bf16 %v896_v55, %v895_v1  ;;  %v1986_v57 = vpop.f32.mrb[40].mxu0  ;;  %2178 = vmatprep.subr.bf16.mxu1 %v2602_v33  ;;  %2209 = vmatpush3.bf16.msra.mxu0 (!%p1763_p5), %v2208_v32  ;;  %v2214_v41 = vpack.c.bf16 (!%p1763_p5), %v1190_v39, %v1189_v38  ;;  %v1197_v54 = vld [vmem:[%s2936_s4 + $0x80] sm:$0xff] (!%p1763_p5)  ;;  %v1198_v1 = vld [vmem:[%s2936_s4 + $0x88] sm:$0xff] (!%p1763_p5) }
 0x145   : > { %v773_v44 = vadd.f32 %v1986_v57, %v2546_v50  ;;  %v764_v58 = vpop.f32.mrb[41].mxu0  ;;  %2210 = vmatprep.subr.bf16.mxu0 (!%p1763_p5), %v2399_v19  ;;  %v2226_v55 = vpack.c.bf16 (!%p1763_p5), %v1198_v1, %v1197_v54 }
 0x146   : > { %v765_v62 = vadd.f32 %v764_v58, %v2546_v50  ;;  %v1987_v2 = vpop.f32.mrb[42].mxu0  ;;  %v1202_v58 = vld [vmem:[%s2936_s4 + $0xa8] sm:$0xff] (!%p1763_p5) }
 0x147   : > { %v901_v3 = vmax.f32 %v773_v44, 0.0  ;;  %v776_v4 = vadd.f32 %v1987_v2, %v2546_v50  ;;  %2180 = vmatpush3.bf16.msra.mxu1 %v2179_v63  ;;  %v767_v60 = vpop.f32.mrb[43].mxu0  ;;  %v1200_v63 = vld [vmem:[%s2936_s4 + $0x98] sm:$0xff] (!%p1763_p5)  ;;  %v1201_v44 = vld [vmem:[%s2936_s4 + $0xa0] sm:$0xff] (!%p1763_p5)  ;;  %v1203_v2 = vld [vmem:[%s2936_s4 + $0xb0] sm:$0xff] (!%p1763_p5) }
 0x148   : > { %v768_v5 = vadd.f32 %v767_v60, %v2546_v50  ;;  %2182 = vmatprep.subr.bf16.mxu1 %v2598_v30  ;;  %v899_v8 = vmax.f32 %v765_v62, 0.0  ;;  %v2397_v50 = vmov 0.0   ;;  %2212 = vmatpush3.bf16.msra.mxu0 (!%p1763_p5), %v2211_v59  ;;  %v2232_v62 = vpack.c.bf16 (!%p1763_p5), %v1202_v58, %v1201_v44  ;;  %v1205_v60 = vld [vmem:[%s2936_s4 + $0xc0] sm:$0xff] (!%p1763_p5) }
 0x149   : > { %v902_v7 = vmax.f32 %v776_v4, 0.0  ;;  %2237 = vmatprep.subr.bf16.mxu0 (!%p1763_p5), %v2399_v19 }
 0x14a   : > { %v900_v10 = vmax.f32 %v768_v5, 0.0  ;;  %v1206_v5 = vld [vmem:[%s2936_s4 + $0xc8] sm:$0xff] (!%p1763_p5) }
 0x14b   : > { %v2191_v11 = vpack.c.bf16 %v902_v7, %v901_v3  ;;  %2184 = vmatpush3.bf16.msra.mxu1 %v2183_v56  ;;  %v1199_v56 = vld [vmem:[%s2936_s4 + $0x90] sm:$0xff] (!%p1763_p5)  ;;  %v1204_v3 = vld [vmem:[%s2936_s4 + $0xb8] sm:$0xff] (!%p1763_p5) }
 0x14c   : > { %v2187_v33 = vpack.c.bf16 %v900_v10, %v899_v8  ;;  %2186 = vmatprep.subr.bf16.mxu1 %v2614_v9  ;;  %v2229_v57 = vpack.c.bf16 (!%p1763_p5), %v1200_v63, %v1199_v56  ;;  %v2235_v4 = vpack.c.bf16 (!%p1763_p5), %v1204_v3, %v1203_v2  ;;  %v1207_v7 = vld [vmem:[%s2936_s4 + $0xd0] sm:$0xff] (!%p1763_p5)  ;;  %v2238_v8 = vpack.c.bf16 (!%p1763_p5), %v1206_v5, %v1205_v60  ;;  %v1208_v10 = vld [vmem:[%s2936_s4 + $0xd8] sm:$0xff] (!%p1763_p5) }
 0x14f   : > { %2188 = vmatpush3.bf16.msra.mxu1 %v2187_v33  ;;  %v1209_v33 = vld [vmem:[%s2936_s4 + $0xe0] sm:$0xff] (!%p1763_p5) }
 0x150   : > { %2190 = vmatprep.subr.bf16.mxu1 %v2612_v6  ;;  %v2672_v6 = vand.u32 127, %v290_v37 }
 0x152   : > { %vm1601_vm11 = vcmp.ge.s32.totalorder (!%p1763_p5), %v2672_v6, 16  ;;  %vm1602_vm12 = vcmp.lt.s32.totalorder (!%p1763_p5), %v2672_v6, 32 }
 0x153   : > { %2192 = vmatpush3.bf16.msra.mxu1 %v2191_v11  ;;  %v2241_v11 = vpack.c.bf16 (!%p1763_p5), %v1208_v10, %v1207_v7  ;;  %vm1603_vm13 = vmand (!%p1763_p5), %vm1601_vm11, %vm1602_vm12 }
 0x154   : > { %2194 = vmatprep.subr.bf16.mxu1 %v2628_v48  ;;  %v1091_v48 = vstv %s1760_s10 }
 0x157   : > { %2196 = vmatpush3.bf16.msra.mxu1 %v2570_v29  ;;  %v1092_v29 = vadd.s32 %v1091_v48, %v2672_v6 }
 0x158   : > { %2198 = vmatprep.subr.bf16.mxu1 %v2626_v0 }
 0x159   : > { %vm1093_vm4 = vcmp.eq.s32.totalorder %v2527_v40, %v1092_v29  ;;  %v1213_v29 = vld [vmem:[%s2936_s4 + $0x100] sm:$0xff] (!%p1763_p5) }
 0x15a   : > { %v1094_v13 = vsel %vm1093_vm4, 1.0, %v2397_v50 }
 0x15b   : > { %2200 = vmatpush3.bf16.msra.mxu1 %v2566_v26 }
 0x15c   : > { %2008 = vmatprep.subr.mxu1 %v2397_v50 }
 0x15e   : > { %1081 = vmatmul.mubr.f32.vlgmr.msra.gmra.mrb[22].mxu1 %v2537_v47 }
 0x15f   : > { %2010 = vmatprep.mubr.msk.f32.mxu1 %vm2398_vm3, %v2397_v50  ;;  %v1210_v50 = vld [vmem:[%s2936_s4 + $0xe8] sm:$0xff] (!%p1763_p5) }
 0x211   : > { %v1838_v30 = vpop.f32.mrb[20].mxu1 }
 0x212   : > { %v1839_v9 = vpop.f32.mrb[21].mxu1 }
 0x213   : > { %v1840_v27 = vadd.f32 %v1839_v9, %v1838_v30  ;;  %v2244_v30 = vpack.c.bf16 (!%p1763_p5), %v1210_v50, %v1209_v33  ;;  %v1211_v9 = vld [vmem:[%s2936_s4 + $0xf0] sm:$0xff] (!%p1763_p5) }
 0x231   : > { %v1873_v12 = vpop.f32.mrb[22].mxu1 }
 0x232   : > { %v1874_v0 = vpop.f32.mrb[23].mxu1 }
 0x233   : > { %v1875_v26 = vadd.f32 %v1874_v0, %v1873_v12  ;;  %v1214_v12 = vld [vmem:[%s2936_s4 + $0x108] sm:$0xff] (!%p1763_p5) }
 0x234   : > { %v2250_v0 = vpack.c.bf16 (!%p1763_p5), %v1214_v12, %v1213_v29 }
 0x235   : > { %v1083_v47 = vadd.f32 %v1875_v26, %v1840_v27  ;;  %v1212_v27 = vld [vmem:[%s2936_s4 + $0xf8] sm:$0xff] (!%p1763_p5)  ;;  %v1215_v26 = vld [vmem:[%s2936_s4 + $0x110] sm:$0xff] (!%p1763_p5) }
 0x236   : > { %v2247_v48 = vpack.c.bf16 (!%p1763_p5), %v1212_v27, %v1211_v9 }
 0x237   : > { %2009 = vmatpush3.msk.msra.mxu1 %vm566_vm2, %v1083_v47  ;;  %v1216_v47 = vld [vmem:[%s2936_s4 + $0x118] sm:$0xff] (!%p1763_p5) }
 0x238   : > { %2011 = vmatmul.mubr.msk.f32.vlgmr.msra.gmra.mrb[24].mxu1 %vm1096_vm5, %v1094_v13  ;;  %2213 = vmatprep.subr.bf16.mxu1 (!%p1763_p5), %v2399_v19  ;;  %v2253_v13 = vpack.c.bf16 (!%p1763_p5), %v1216_v47, %v1215_v26  ;;  %v1374_v26 = vsub.s32 (!%p1763_p5), 2, %v2527_v40 }
 0x239   : > { %2064 = vmatprep.mubr.msk.f32.mxu1 (!%p1763_p5), %vm2400_vm7, %v2401_v22  ;;  %2215 = vmatpush3.bf16.msra.mxu1 (!%p1763_p5), %v2214_v41 }
 0x23a   : > { %2216 = vmatprep.subr.bf16.mxu1 (!%p1763_p5), %v2399_v19 }
 0x23d   : > { %2218 = vmatpush3.bf16.msra.mxu1 (!%p1763_p5), %v2217_v31 }
 0x23e   : > { %2219 = vmatprep.subr.bf16.mxu1 (!%p1763_p5), %v2399_v19 }
 0x241   : > { %2221 = vmatpush3.bf16.msra.mxu1 (!%p1763_p5), %v2220_v51 }
 0x242   : > { %2222 = vmatprep.subr.bf16.mxu1 (!%p1763_p5), %v2399_v19 }
 0x245   : > { %2224 = vmatpush3.bf16.msra.mxu1 (!%p1763_p5), %v2223_v53 }
 0x246   : > { %2225 = vmatprep.subr.bf16.mxu1 (!%p1763_p5), %v2399_v19 }
 0x249   : > { %2227 = vmatpush3.bf16.msra.mxu1 (!%p1763_p5), %v2226_v55 }
 0x24a   : > { %2228 = vmatprep.subr.bf16.mxu1 (!%p1763_p5), %v2399_v19 }
 0x24d   : > { %2230 = vmatpush3.bf16.msra.mxu1 (!%p1763_p5), %v2229_v57 }
 0x24e   : > { %2231 = vmatprep.subr.bf16.mxu1 (!%p1763_p5), %v2399_v19 }
 0x251   : > { %2233 = vmatpush3.bf16.msra.mxu1 (!%p1763_p5), %v2232_v62 }
 0x252   : > { %2234 = vmatprep.subr.bf16.mxu1 (!%p1763_p5), %v2399_v19 }
 0x255   : > { %2236 = vmatpush3.bf16.msra.mxu1 (!%p1763_p5), %v2235_v4 }
 0x256   : > { %2261 = vmatprep.subr.bf16.mxu1 (!%p1763_p5), %v2399_v19 }
 0x308   : > { %1179 = sbr.rel (%p1763_p5) target bundleno = 2094 (0x82e), region = 48 }
 0x30b   : > { %v1169_v15 = vpop.f32.mrb[24].mxu1 }
 0x30c   : > { %v1173_v25 = vadd.f32 %v1169_v15, %v1095_v14  ;;  %v2012_v37 = vpop.f32.mrb[25].mxu1  ;;  %v1217_v14 = vld [vmem:[%s2936_s4 + $0x120] sm:$0xff] (!%p1763_p5)  ;;  %v1218_v15 = vld [vmem:[%s2936_s4 + $0x128] sm:$0xff] (!%p1763_p5) }
 0x30d   : > { %v1239_v37 = vsub.s32 (!%p1763_p5), 0, %v2527_v40 }
 0x30e   : > { %1175 = vst.msk [vmem:[#allocation2] sm:$0xf] %vm1174_vm6, %v1173_v25  ;;  %v2256_v25 = vpack.c.bf16 (!%p1763_p5), %v1218_v15, %v1217_v14  ;;  %v1375_v15 = vrot.slane (!%p1763_p5), %v2543_v49, %v1374_v26 }
 0x30f   : > { %v1240_v17 = vrot.slane %v2543_v49, %v1239_v37 }
 0x315   : > { %v1180_v36 = vld [vmem:[#allocation2] sm:$0xf] }
 0x316   : > { %2030 = vmatmul.mubr.msk.f32.vlgmr.msra.gmra.mrb[0].mxu0 %vm1241_vm8, %v1180_v36 }
 0x317   : > { %2099 = vmatprep.mubr.msk.f32.mxu0 %vm2400_vm7, %v2401_v22  ;;  %2239 = vmatpush3.bf16.msra.mxu0 %v2238_v8 }
 0x318   : > { %2240 = vmatprep.subr.bf16.mxu0 %v2399_v19 }
 0x31b   : > { %2242 = vmatpush3.bf16.msra.mxu0 %v2241_v11 }
 0x31c   : > { %2243 = vmatprep.subr.bf16.mxu0 %v2399_v19 }
 0x31f   : > { %2245 = vmatpush3.bf16.msra.mxu0 %v2244_v30 }
 0x320   : > { %2246 = vmatprep.subr.bf16.mxu0 %v2399_v19 }
 0x323   : > { %2248 = vmatpush3.bf16.msra.mxu0 %v2247_v48 }
 0x324   : > { %2249 = vmatprep.subr.bf16.mxu0 %v2399_v19 }
 0x327   : > { %2251 = vmatpush3.bf16.msra.mxu0 %v2250_v0  ;;  %v1369_v0 = vsub.s32 1, %v2527_v40 }
 0x328   : > { %2252 = vmatprep.subr.bf16.mxu0 %v2399_v19 }
 0x329   : > { %v1370_v47 = vrot.slane %v2543_v49, %v1369_v0 }
 0x32b   : > { %2254 = vmatpush3.bf16.msra.mxu0 %v2253_v13 }
 0x32c   : > { %2255 = vmatprep.subr.bf16.mxu0 %v2399_v19 }
 0x32f   : > { %2257 = vmatpush3.bf16.msra.mxu0 %v2256_v25 }
 0x330   : > { %2258 = vmatprep.subr.bf16.mxu0 %v2399_v19 }
 0x3e9   : > { %v1311_v20 = vpop.f32.mrb[0].mxu0 }
 0x3ea   : > { %v1312_v21 = vadd.f32 %v1311_v20, %v1240_v17  ;;  %v2031_v23 = vpop.f32.mrb[1].mxu0 }
 0x3eb   : > { %v1222_v23 = vld [vmem:[%s2936_s4 + $0x148] sm:$0xff] }
 0x3ec   : > { %v1319_v61 = vmul.f32 %v1765_v16, %v1312_v21  ;;  %v1330_v24 = vmul.f32 %v1318_v18, %v1312_v21 }
 0x3ee   : > { %v1321_v32 = vsel %vm1320_vm10, %v1319_v61, 0.0  ;;  %v1331_v34 = vsel %vm1320_vm10, %v1330_v24, 0.0  ;;  %v1223_v61 = vld [vmem:[%s2936_s4 + $0x150] sm:$0xff] }
 0x3ef   : > { %v1322_v35 = vrot.slane %v1321_v32, 4  ;;  %v1332_v59 = vrot.slane %v1331_v34, 4 }
 0x3f1   : > { %v1323_v36 = vadd.f32 %v1322_v35, %v1321_v32  ;;  %v1333_v38 = vadd.f32 %v1332_v59, %v1331_v34  ;;  %v1224_v32 = vld [vmem:[%s2936_s4 + $0x158] sm:$0xff]  ;;  %v1225_v35 = vld [vmem:[%s2936_s4 + $0x160] sm:$0xff]  ;;  %v1226_v59 = vld [vmem:[%s2936_s4 + $0x168] sm:$0xff] }
 0x3f2   : > { %v2265_v34 = vpack.c.bf16 %v1224_v32, %v1223_v61 }
 0x3f3   : > { %v1324_v39 = vrot.slane %v1323_v36, 2  ;;  %v1334_v41 = vrot.slane %v1333_v38, 2 }
 0x3f5   : > { %v1325_v42 = vadd.f32 %v1324_v39, %v1323_v36  ;;  %v1335_v43 = vadd.f32 %v1334_v41, %v1333_v38  ;;  %v2268_v36 = vpack.c.bf16 %v1226_v59, %v1225_v35  ;;  %v1227_v38 = vld [vmem:[%s2936_s4 + $0x170] sm:$0xff]  ;;  %v1228_v39 = vld [vmem:[%s2936_s4 + $0x178] sm:$0xff] }
 0x3f6   : > { %v2271_v41 = vpack.c.bf16 %v1228_v39, %v1227_v38 }
 0x3f7   : > { %v1326_v31 = vrot.slane %v1325_v42, 1  ;;  %v1336_v45 = vrot.slane %v1335_v43, 1 }
 0x3f9   : > { %v1327_v46 = vadd.f32 %v1326_v31, %v1325_v42  ;;  %v1337_v51 = vadd.f32 %v1336_v45, %v1335_v43  ;;  %v1229_v42 = vld [vmem:[%s2936_s4 + $0x180] sm:$0xff]  ;;  %v1230_v43 = vld [vmem:[%s2936_s4 + $0x188] sm:$0xff]  ;;  %v1231_v45 = vld [vmem:[%s2936_s4 + $0x190] sm:$0xff] }
 0x3fa   : > { %v2274_v31 = vpack.c.bf16 %v1230_v43, %v1229_v42 }
 0x3fb   : > { %v1328_v52 = vmul.f32 0.5, %v1327_v46  ;;  %v1338_v28 = vmul.f32 0.5, %v1337_v51  ;;  %v1232_v46 = vld [vmem:[%s2936_s4 + $0x198] sm:$0xff] }
 0x3fc   : > { %v2277_v51 = vpack.c.bf16 %v1232_v46, %v1231_v45 }
 0x3fd   : > { %v1329_v53 = vmul.f32 %v1765_v16, %v1328_v52  ;;  %v1339_v54 = vmul.f32 %v1338_v28, %v1318_v18  ;;  %v1233_v52 = vld [vmem:[%s2936_s4 + $0x1a0] sm:$0xff]  ;;  %v1234_v28 = vld [vmem:[%s2936_s4 + $0x1a8] sm:$0xff] }
 0x3ff   : > { %v1340_v1 = vadd.f32 %v1339_v54, %v1329_v53  ;;  %v2280_v53 = vpack.c.bf16 %v1234_v28, %v1233_v52  ;;  %v1380_v54 = vsub.s32 3, %v2527_v40 }
 0x401   : > { %v1341_v55 = vsub.f32 %v1312_v21, %v1340_v1  ;;  %v1221_v21 = vld [vmem:[%s2936_s4 + $0x140] sm:$0xff]  ;;  %v1381_v1 = vrot.slane %v2543_v49, %v1380_v54 }
 0x402   : > { %v2262_v24 = vpack.c.bf16 %v1222_v23, %v1221_v21 }
 0x403   : > { %v1342_v56 = vmul.f32 %v1341_v55, %v1341_v55 }
 0x405   : > { %v1343_v63 = vmul.f32 %v1765_v16, %v1342_v56  ;;  %v1353_v57 = vmul.f32 %v1342_v56, %v1318_v18 }
 0x407   : > { %v1344_v44 = vsel %vm1320_vm10, %v1343_v63, 0.0  ;;  %v1354_v58 = vsel %vm1320_vm10, %v1353_v57, 0.0  ;;  %v1235_v57 = vld [vmem:[%s2936_s4 + $0x1b0] sm:$0xff] }
 0x408   : > { %v1345_v62 = vrot.slane %v1344_v44, 4  ;;  %v1355_v2 = vrot.slane %v1354_v58, 4 }
 0x40a   : > { %v1346_v3 = vadd.f32 %v1345_v62, %v1344_v44  ;;  %v1356_v4 = vadd.f32 %v1355_v2, %v1354_v58  ;;  %v1236_v44 = vld [vmem:[%s2936_s4 + $0x1b8] sm:$0xff] }
 0x40b   : > { %v2283_v58 = vpack.c.bf16 %v1236_v44, %v1235_v57 }
 0x40c   : > { %v1347_v60 = vrot.slane %v1346_v3, 2  ;;  %v1357_v5 = vrot.slane %v1356_v4, 2 }
 0x40e   : > { %v1348_v7 = vadd.f32 %v1347_v60, %v1346_v3  ;;  %v1358_v8 = vadd.f32 %v1357_v5, %v1356_v4  ;;  %v1529_v5 = vsub.s32 5, %v2527_v40 }
 0x410   : > { %v1349_v10 = vrot.slane %v1348_v7, 1  ;;  %v1359_v11 = vrot.slane %v1358_v8, 1 }
 0x412   : > { %v1350_v33 = vadd.f32 %v1349_v10, %v1348_v7  ;;  %v1360_v50 = vadd.f32 %v1359_v11, %v1358_v8  ;;  %v1530_v7 = vrot.slane %v2543_v49, %v1529_v5  ;;  %v1766_v8 = vsel %vm1603_vm13, 1.0, %v2401_v22 }
 0x414   : > { %v1351_v30 = vmul.f32 0.5, %v1350_v33  ;;  %v1361_v9 = vmul.f32 0.5, %v1360_v50 }
 0x416   : > { %v1352_v27 = vmul.f32 %v1765_v16, %v1351_v30  ;;  %v1362_v48 = vmul.f32 %v1361_v9, %v1318_v18  ;;  %v1219_v16 = vld [vmem:[%s2936_s4 + $0x130] sm:$0xff]  ;;  %v1220_v18 = vld [vmem:[%s2936_s4 + $0x138] sm:$0xff] }
 0x417   : > { %v2259_v20 = vpack.c.bf16 %v1220_v18, %v1219_v16 }
 0x418   : > { %v1363_v29 = vadd.f32 %v1362_v48, %v1352_v27 }
 0x419   : > { %2260 = vmatpush3.bf16.msra.mxu0 %v2259_v20 }
 0x41a   : > { %v1364_v12 = vadd.f32 1e-05, %v1363_v29 }
 0x41c   : > { %2353 = vrsqrt.f32 %v1364_v12 }
 0x426   : > { %v2354_v13 = vpop.eup %2353 }
 0x427   : > { %v1366_v14 = vmul.f32 %v2354_v13, %v1341_v55 }
 0x429   : > { %v1371_v25 = vmul.f32 %v1370_v47, %v1366_v14 }
 0x42b   : > { %v1376_v37 = vadd.f32 %v1375_v15, %v1371_v25 }
 0x42d   : > { %v1377_v17 = vmax.f32 %v1376_v37, 0.0 }
 0x42f   : > { %2065 = vmatmul.mubr.f32.vlgmr.msra.gmra.mrb[0].mxu1 %v1377_v17 }
 0x430   : > { %2134 = vmatprep.mubr.msk.f32.mxu1 %vm2400_vm7, %v2401_v22  ;;  %2263 = vmatpush3.bf16.msra.mxu1 %v2262_v24 }
 0x431   : > { %2264 = vmatprep.subr.bf16.mxu1 %v2399_v19 }
 0x434   : > { %2266 = vmatpush3.bf16.msra.mxu1 %v2265_v34 }
 0x435   : > { %2267 = vmatprep.subr.bf16.mxu1 %v2399_v19 }
 0x438   : > { %2269 = vmatpush3.bf16.msra.mxu1 %v2268_v36 }
 0x439   : > { %2270 = vmatprep.subr.bf16.mxu1 %v2399_v19 }
 0x43c   : > { %2272 = vmatpush3.bf16.msra.mxu1 %v2271_v41 }
 0x43d   : > { %2273 = vmatprep.subr.bf16.mxu1 %v2399_v19 }
 0x440   : > { %2275 = vmatpush3.bf16.msra.mxu1 %v2274_v31 }
 0x441   : > { %2276 = vmatprep.subr.bf16.mxu1 %v2399_v19 }
 0x444   : > { %2278 = vmatpush3.bf16.msra.mxu1 %v2277_v51 }
 0x445   : > { %2279 = vmatprep.subr.bf16.mxu1 %v2399_v19 }
 0x448   : > { %2281 = vmatpush3.bf16.msra.mxu1 %v2280_v53 }
 0x449   : > { %2282 = vmatprep.subr.bf16.mxu1 %v2399_v19  ;;  %v1454_v19 = vsub.s32 4, %v2527_v40 }
 0x44b   : > { %v1455_v62 = vrot.slane %v2543_v49, %v1454_v19 }
 0x44c   : > { %2284 = vmatpush3.bf16.msra.mxu1 %v2283_v58 }
 0x502   : > { %v1448_v55 = vpop.f32.mrb[0].mxu1 }
 0x503   : > { %v1449_v56 = vadd.f32 %v1448_v55, %v1381_v1  ;;  %v2066_v63 = vpop.f32.mrb[1].mxu1 }
 0x505   : > { %2100 = vmatmul.mubr.f32.vlgmr.msra.gmra.mrb[2].mxu0 %v1449_v56  ;;  %v1606_v11 = vmul.f32 %v1766_v8, %v1449_v56 }
 0x507   : > { %v1615_v29 = vmul.f32 %v1606_v11, %v1606_v11 }
 0x509   : > { %v1616_v40 = vsel %vm1320_vm10, %v1615_v29, 0.0 }
 0x5d8   : > { %v1522_v2 = vpop.f32.mrb[2].mxu0 }
 0x5d9   : > { %v1523_v3 = vadd.f32 %v1522_v2, %v1455_v62  ;;  %v2101_v4 = vpop.f32.mrb[3].mxu0 }
 0x5db   : > { %v1526_v60 = vmax.f32 %v1523_v3, 0.0 }
 0x5dd   : > { %2135 = vmatmul.mubr.f32.vlgmr.msra.gmra.mrb[2].mxu1 %v1526_v60 }
 0x6b0   : > { %v1597_v10 = vpop.f32.mrb[2].mxu1 }
 0x6b1   : > { %v1598_v33 = vadd.f32 %v1597_v10, %v1530_v7  ;;  %v2136_v50 = vpop.f32.mrb[3].mxu1 }
 0x6b3   : > { %v1611_v30 = vmul.f32 %v1598_v33, %v1598_v33  ;;  %v1607_v9 = vmul.f32 %v1606_v11, %v1598_v33 }
 0x6b5   : > { %v1612_v27 = vsel %vm1320_vm10, %v1611_v30, 0.0  ;;  %v1608_v48 = vsel %vm1320_vm10, %v1607_v9, 0.0 }
 0x6b6   : > { %1613 = vadd.xlane.f32.xlu0 %v1612_v27  ;;  %1609 = vadd.xlane.f32.xlu1 %v1608_v48 }
 0x6ba   : > { %1617 = vadd.xlane.f32.xlu0 %v1616_v40 }
 0x743   : > { %v1614_v6 = vpop.xlane.xlu0 %1613  ;;  %v1610_v26 = vpop.xlane.xlu1 %1609 }
 0x747   : > { %v1618_v49 = vpop.xlane.xlu0 %1617 }
 0x748   : > { %v1619_v12 = vmul.f32 %v1618_v49, %v1614_v6 }
 0x74a   : > { %v1620_v22 = vadd.f32 1e-24, %v1619_v12 }
 0x74c   : > { %2355 = vrsqrt.f32 %v1620_v22 }
 0x756   : > { %v2356_v0 = vpop.eup %2355 }
 0x757   : > { %v1622_v47 = vmul.f32 %v2356_v0, %v1610_v26 }
 0x759   : > { %v1623_v13 = vmul.f32 2.0, %v1622_v47 }
 0x75b   : > { %v1624_v14 = vsub.f32 2.0, %v1623_v13 }
 0x75d   : > { %v1626_v15 = vsel %vm1625_vm14, %v1624_v14, 0.0 }
 0x75e   : > { %1627 = vadd.xlane.f32.xlu1 %v1626_v15 }
 0x7eb   : > { %v1628_v25 = vpop.xlane.xlu1 %1627 }
 0x7ec   : > { %v1629_v37 = vrot.slane %v1628_v25, 4 }
 0x7ee   : > { %v1630_v17 = vadd.f32 %v1629_v37, %v1628_v25 }
 0x7f0   : > { %v1631_v16 = vrot.slane %v1630_v17, 2 }
 0x7f2   : > { %v1632_v18 = vadd.f32 %v1631_v16, %v1630_v17 }
 0x7f4   : > { %v1633_v20 = vrot.slane %v1632_v18, 1 }
 0x7f6   : > { %v1634_v21 = vadd.f32 %v1633_v20, %v1632_v18 }
 0x7f8   : > { %2293 = vpush %v1634_v21 }
 0x829   : > { %s2294_s8 = spop %2293 }
 0x82a   : > { %s1636_s9 = smul.f32 0.5, %s2294_s8 }
 0x82c   : > { %v1637_v23 = vstv %s1636_s9 }
 0x82d   : > { %1639 = vst.msk [vmem:[#allocation3] sm:$0x1] %vm1638_vm15, %v1637_v23 }
 0x82e PF: > { %p2299_p6 = scmp.eq.s32.totalorder %s2439_s19, 1  ;;  %s2402_s10 = smov [#allocation3]  }
 0x82f   : > { %s1647_s11 = sshll.u32 %s2402_s10, 4  ;;  %s1648_s11 = int_to_ptr.vmem [resolvable:$true] %s1647_s11 }
 0x830   : > { %s2357_s12 = scalar_lea.vmem %s1648_s11, 16  ;;  %s2363_s13 = scalar_lea.vmem %s1648_s11, 32 }
 0x831   : > { %p2358_p7 = scmp.ne.s32.totalorder %s1648_s11, %s2357_s12  ;;  %p2364_p10 = scmp.lt.s32.totalorder %s1648_s11, %s1648_s11 }
 0x832   : > { %p2365_p11 = scmp.lt.s32.totalorder %s2363_s13, %s2357_s12 }
 0x833   : > { %p2359_p8 = pnand %p2358_p7, %p2299_p6 }
 0x834   : > { %p2366_p12 = por %p2365_p11, %p2364_p10 }
 0x835   : > { %p2360_p9 = pneg %p2359_p8 }
 0x837   : > { %p2367_p13 = pnand %p2366_p12, %p2360_p9 }
 0x839   : > { %2370 = shalt.err (!%p2367_p13)
}
 0x83a   : > { %s2371_s16 = scalar_lea.hbm %s2937_s5, 16 }
 0x83b   : > { %p2372_p0 = scmp.ne.s32.totalorder %s2937_s5, %s2371_s16  ;;  %p2377_p3 = scmp.lt.u32.totalorder %s2371_s16, %s2937_s5 }
 0x83d   : > { %p2373_p1 = pnand %p2372_p0, %p2299_p6 }
 0x83f   : > { %p2374_p2 = pneg %p2373_p1 }
 0x841   : > { %p2379_p4 = pnand %p2377_p3, %p2374_p2 }
 0x843   : > { %2382 = shalt.err (!%p2379_p4)
}
 0x844   : > { %2296 = dma.vmem_to_hbm [thread:$0]  (%p2299_p6), %s1648_s11, 16, %s2937_s5, [#allocation4]  }
 0x845   : > { %2388 = dma.done.wait (%p2299_p6), [#allocation4], 16  }
 0x846   : > { %2390 = vsyncadd (%p2299_p6), [#allocation4], 4294967280 }
 0x847 PF: > { %s16_s18 = sadd.s32 1, %s2393_s18  }
 0x848   : > { %p13_p5 = scmp.ge.s32.totalorder %s16_s18, 4  }
 0x84a   :  { %15 = sbr.rel (!%p13_p5) target bundleno = 1 (0x1), region = 75 }
 0x851   :  { %1660 = vsyncpa [#allocation4], 1 }
 0x852   :  { %1662 = vsyncpa [#allocation4 + $0x1], 1 }

</bundles_post_ra>
